<compile_context>
chip_gen: v5e
topology: v5e:2x2
jax: 0.10.0
libtpu: 0.0.40
codegen_flags: <defaults>
</compile_context>

<pallas_src>
import functools
import math

import jax
import jax.numpy as jnp
from jax import lax
from jax.experimental import pallas as pl
from jax.experimental.pallas import tpu as pltpu


# ----------------------------- tiling helpers ------------------------------

def _tile(dim, target, align):
    """Largest tile <= target that is a multiple of `align` and divides `dim`.
    Falls back to the full dimension (always a legal block)."""
    if dim <= target:
        return dim
    t = (target // align) * align
    while t >= align:
        if dim % t == 0:
            return t
        t -= align
    return dim


def _cparams(dim_sem):
    return pltpu.CompilerParams(
        dimension_semantics=dim_sem,
        vmem_limit_bytes=48 * 1024 * 1024,   # under v7x's 64 MiB physical VMEM
    )


# ----------------------------- Pallas kernels ------------------------------

def _apply_ln(x, g, b, eps=1e-5):
    mean = jnp.mean(x, axis=-1, keepdims=True)
    var = jnp.mean((x - mean) ** 2, axis=-1, keepdims=True)
    return (x - mean) * lax.rsqrt(var + eps) * g + b


def _ln_matmul_bias_kernel(x_ref, g_ref, b_ref, w_ref, bias_ref, o_ref):
    """out = LayerNorm(x) @ W + bias   (W is bf16, f32 accumulation)."""
    xn = _apply_ln(x_ref[...], g_ref[...], b_ref[...])
    o_ref[...] = (jnp.dot(xn.astype(w_ref.dtype), w_ref[...],
                          preferred_element_type=jnp.float32)
                  + bias_ref[...]).astype(o_ref.dtype)


def _ln_matmul_kernel(x_ref, g_ref, b_ref, w_ref, o_ref):
    """out = LayerNorm(x) @ W   (no bias; used for the tied lm_head)."""
    xn = _apply_ln(x_ref[...], g_ref[...], b_ref[...])
    o_ref[...] = jnp.dot(xn.astype(w_ref.dtype), w_ref[...],
                         preferred_element_type=jnp.float32).astype(o_ref.dtype)


def ln_matmul(x2d, gamma, beta, w, bias=None, *, tm=256, tn=512):
    """Fused LayerNorm + Linear, tiled over (rows, out-cols).

    x block is resident across the inner (column) axis, so LN work and the x
    DMA are not repeated per column tile; weight tiles stream column-by-column.
    """
    N, C = x2d.shape
    Cout = w.shape[1]
    bm = _tile(N, tm, 8)
    bn = _tile(Cout, tn, 128)
    grid = (N // bm, Cout // bn)

    x_spec = pl.BlockSpec((bm, C), lambda i, j: (i, 0))
    vec_spec = pl.BlockSpec((1, C), lambda i, j: (0, 0))
    w_spec = pl.BlockSpec((C, bn), lambda i, j: (0, j))
    out_spec = pl.BlockSpec((bm, bn), lambda i, j: (i, j))

    if bias is not None:
        kernel = _ln_matmul_bias_kernel
        in_specs = [x_spec, vec_spec, vec_spec, w_spec,
                    pl.BlockSpec((1, bn), lambda i, j: (0, j))]
        args = (x2d, gamma.reshape(1, -1), beta.reshape(1, -1), w,
                bias.reshape(1, -1))
    else:
        kernel = _ln_matmul_kernel
        in_specs = [x_spec, vec_spec, vec_spec, w_spec]
        args = (x2d, gamma.reshape(1, -1), beta.reshape(1, -1), w)

    return pl.pallas_call(
        kernel,
        out_shape=jax.ShapeDtypeStruct((N, Cout), jnp.float32),
        grid=grid,
        in_specs=in_specs,
        out_specs=out_spec,
        compiler_params=_cparams(("parallel", "parallel")),
    )(*args)


def _matmul_bias_residual_kernel(y_ref, w_ref, bias_ref, res_ref, o_ref):
    """out = y @ W + bias + residual   (attention output projection)."""
    o_ref[...] = (jnp.dot(y_ref[...].astype(w_ref.dtype), w_ref[...],
                          preferred_element_type=jnp.float32)
                  + bias_ref[...] + res_ref[...]).astype(o_ref.dtype)


def matmul_bias_residual(y2d, w, bias, res2d, *, tm=256, tn=512):
    N, K = y2d.shape
    Cout = w.shape[1]
    bm = _tile(N, tm, 8)
    bn = _tile(Cout, tn, 128)
    grid = (N // bm, Cout // bn)
    return pl.pallas_call(
        _matmul_bias_residual_kernel,
        out_shape=jax.ShapeDtypeStruct((N, Cout), jnp.float32),
        grid=grid,
        in_specs=[
            pl.BlockSpec((bm, K), lambda i, j: (i, 0)),
            pl.BlockSpec((K, bn), lambda i, j: (0, j)),
            pl.BlockSpec((1, bn), lambda i, j: (0, j)),
            pl.BlockSpec((bm, bn), lambda i, j: (i, j)),
        ],
        out_specs=pl.BlockSpec((bm, bn), lambda i, j: (i, j)),
        input_output_aliases={3: 0},       # residual buffer reused as output
        compiler_params=_cparams(("parallel", "parallel")),
    )(y2d, w, bias.reshape(1, -1), res2d)


def _ln_mlp_residual_kernel(x_ref, g_ref, b_ref, w1_ref, b1_ref, w2_ref,
                            b2_ref, o_ref):
    """out = x + c_proj(gelu_tanh(c_fc(LayerNorm(x))))."""
    x = x_ref[...]
    xn = _apply_ln(x, g_ref[...], b_ref[...])
    h = (jnp.dot(xn.astype(w1_ref.dtype), w1_ref[...],
                 preferred_element_type=jnp.float32) + b1_ref[...])
    c = math.sqrt(2.0 / math.pi)                     # nn.GELU(approximate='tanh')
    h = 0.5 * h * (1.0 + jnp.tanh(c * (h + 0.044715 * h * h * h)))
    o_ref[...] = (x + jnp.dot(h.astype(w2_ref.dtype), w2_ref[...],
                              preferred_element_type=jnp.float32)
                  + b2_ref[...]).astype(o_ref.dtype)


def ln_mlp_residual(x2d, gamma, beta, w1, b1, w2, b2, *, tm=256):
    N, C = x2d.shape
    H = w1.shape[1]
    bm = _tile(N, tm, 8)
    grid = (N // bm,)
    return pl.pallas_call(
        _ln_mlp_residual_kernel,
        out_shape=jax.ShapeDtypeStruct((N, C), jnp.float32),
        grid=grid,
        in_specs=[
            pl.BlockSpec((bm, C), lambda i: (i, 0)),
            pl.BlockSpec((1, C), lambda i: (0, 0)),
            pl.BlockSpec((1, C), lambda i: (0, 0)),
            pl.BlockSpec((C, H), lambda i: (0, 0)),     # weight-stationary (bf16)
            pl.BlockSpec((1, H), lambda i: (0, 0)),
            pl.BlockSpec((H, C), lambda i: (0, 0)),
            pl.BlockSpec((1, C), lambda i: (0, 0)),
        ],
        out_specs=pl.BlockSpec((bm, C), lambda i: (i, 0)),
        input_output_aliases={0: 0},        # residual buffer reused as output
        compiler_params=_cparams(("parallel",)),
    )(x2d, gamma.reshape(1, -1), beta.reshape(1, -1),
      w1, b1.reshape(1, -1), w2, b2.reshape(1, -1))


# ---------------------- flash-style causal attention ------------------------

def _flash_update(s, v, m_ref, l_ref, acc_ref):
    m_prev = m_ref[...]
    m_new = jnp.maximum(m_prev, jnp.max(s, axis=-1, keepdims=True))
    alpha = jnp.exp(m_prev - m_new)
    p = jnp.exp(s - m_new)
    l_ref[...] = alpha * l_ref[...] + jnp.sum(p, axis=-1, keepdims=True)
    acc_ref[...] = alpha * acc_ref[...] + jnp.dot(
        p.astype(v.dtype), v, preferred_element_type=jnp.float32)
    m_ref[...] = m_new


def _flash_attn_kernel(q_ref, k_ref, v_ref, o_ref, m_ref, l_ref, acc_ref,
                       *, scale, block_q, block_k):
    qi = pl.program_id(1)
    ki = pl.program_id(2)
    q_start = qi * block_q
    k_start = ki * block_k

    @pl.when(ki == 0)
    def _init():
        m_ref[...] = jnp.full(m_ref.shape, -jnp.inf, m_ref.dtype)
        l_ref[...] = jnp.zeros_like(l_ref)
        acc_ref[...] = jnp.zeros_like(acc_ref)

    q = q_ref[...]            # (block_q, hd)  bf16
    k = k_ref[...]            # (block_k, hd)  bf16
    v = v_ref[...]            # (block_k, hd)  bf16
    qk_dims = (((1,), (1,)), ((), ()))   # contract head_dim of both -> (tq, tk)

    # causal block classification (mask only built for the diagonal blocks,
    # fully-masked blocks above the diagonal skip all compute)
    fully_unmasked = (k_start + block_k - 1) <= q_start
    fully_masked = k_start > (q_start + block_q - 1)
    diagonal = jnp.logical_and(jnp.logical_not(fully_unmasked),
                               jnp.logical_not(fully_masked))

    @pl.when(fully_unmasked)
    def _no_mask():
        s = lax.dot_general(q, k, qk_dims,
                            preferred_element_type=jnp.float32) * scale
        _flash_update(s, v, m_ref, l_ref, acc_ref)

    @pl.when(diagonal)
    def _with_mask():
        s = lax.dot_general(q, k, qk_dims,
                            preferred_element_type=jnp.float32) * scale
        row = lax.broadcasted_iota(jnp.int32, s.shape, 0) + q_start
        col = lax.broadcasted_iota(jnp.int32, s.shape, 1) + k_start
        s = jnp.where(col <= row, s, jnp.float32(-1e30))
        _flash_update(s, v, m_ref, l_ref, acc_ref)

    @pl.when(ki == pl.num_programs(2) - 1)
    def _finalize():
        inv_l = pl.reciprocal(l_ref[...], approx=True)   # EUP, ~free
        o_ref[...] = (acc_ref[...] * inv_l).astype(o_ref.dtype)


def flash_attention(q, k, v, *, block_q=256, block_k=256):
    """q, k, v: (B*n_head, T, head_dim) bf16 -> (B*n_head, T, head_dim) f32."""
    BH, T, hd = q.shape
    bq = _tile(T, block_q, 8)
    bk = _tile(T, block_k, 8)
    grid = (BH, T // bq, T // bk)
    scale = 1.0 / math.sqrt(hd)
    kernel = functools.partial(_flash_attn_kernel, scale=scale,
                               block_q=bq, block_k=bk)
    return pl.pallas_call(
        kernel,
        out_shape=jax.ShapeDtypeStruct((BH, T, hd), jnp.float32),
        grid=grid,
        in_specs=[
            pl.BlockSpec((None, bq, hd), lambda b, i, j: (b, i, 0)),
            pl.BlockSpec((None, bk, hd), lambda b, i, j: (b, j, 0)),
            pl.BlockSpec((None, bk, hd), lambda b, i, j: (b, j, 0)),
        ],
        out_specs=pl.BlockSpec((None, bq, hd), lambda b, i, j: (b, i, 0)),
        scratch_shapes=[
            pltpu.VMEM((bq, 1), jnp.float32),    # running max m
            pltpu.VMEM((bq, 1), jnp.float32),    # running denom l
            pltpu.VMEM((bq, hd), jnp.float32),   # output accumulator
        ],
        compiler_params=_cparams(("parallel", "parallel", "arbitrary")),
    )(q, k, v)
    # TODO(synk): fully-masked KV blocks skip compute but are still DMA'd;
    # skipping the fetch needs a data-dependent grid (scalar-prefetch schedule).


# ------------------------------ Model glue ---------------------------------

class GPTConfig:
    def __init__(self, block_size=1024, vocab_size=50257, n_layer=12,
                 n_head=12, n_embd=768):
        self.block_size = block_size
        self.vocab_size = vocab_size
        self.n_layer = n_layer
        self.n_head = n_head
        self.n_embd = n_embd


def init_params(key, cfg):
    """f32 master weights; Linear weights stored (in_features, out_features)."""
    std = 0.02
    C = cfg.n_embd
    keys = jax.random.split(key, 2 + cfg.n_layer)
    params = {
        # tied: wte is both the token embedding and the lm_head weight (V, C)
        'wte': std * jax.random.normal(keys[0], (cfg.vocab_size, C), jnp.float32),
        'wpe': std * jax.random.normal(keys[1], (cfg.block_size, C), jnp.float32),
        'lnf_g': jnp.ones((C,), jnp.float32),
        'lnf_b': jnp.zeros((C,), jnp.float32),
        'blocks': [],
    }
    for l in range(cfg.n_layer):
        bk = jax.random.split(keys[2 + l], 4)
        params['blocks'].append({
            'ln1_g': jnp.ones((C,), jnp.float32),
            'ln1_b': jnp.zeros((C,), jnp.float32),
            'w_qkv': std * jax.random.normal(bk[0], (C, 3 * C), jnp.float32),
            'b_qkv': jnp.zeros((3 * C,), jnp.float32),
            'w_proj': std * jax.random.normal(bk[1], (C, C), jnp.float32),
            'b_proj': jnp.zeros((C,), jnp.float32),
            'ln2_g': jnp.ones((C,), jnp.float32),
            'ln2_b': jnp.zeros((C,), jnp.float32),
            'w_fc': std * jax.random.normal(bk[2], (C, 4 * C), jnp.float32),
            'b_fc': jnp.zeros((4 * C,), jnp.float32),
            'w_fc_proj': std * jax.random.normal(bk[3], (4 * C, C), jnp.float32),
            'b_fc_proj': jnp.zeros((C,), jnp.float32),
        })
    return params


def prepare_params(params, cfg):
    """One-time prep: bf16 MXU weights + pre-transposed, 128-padded lm_head."""
    V = cfg.vocab_size
    v_pad = ((V + 127) // 128) * 128
    w_lm = jnp.zeros((cfg.n_embd, v_pad), jnp.float32)
    w_lm = w_lm.at[:, :V].set(params['wte'].T)       # tied weights, done ONCE
    out = {
        'wte': params['wte'],                         # f32 for the gather
        'wpe': params['wpe'],
        'lnf_g': params['lnf_g'],
        'lnf_b': params['lnf_b'],
        'w_lm': w_lm.astype(jnp.bfloat16),
        'blocks': [],
    }
    for blk in params['blocks']:
        nb = dict(blk)
        for name in ('w_qkv', 'w_proj', 'w_fc', 'w_fc_proj'):
            nb[name] = blk[name].astype(jnp.bfloat16)
        out['blocks'].append(nb)
    return out


def gpt_forward(params, idx, cfg):
    B, T = idx.shape
    assert T <= cfg.block_size
    C, nh = cfg.n_embd, cfg.n_head
    hd = C // nh
    N = B * T

    tok_emb = params['wte'][idx]                      # (B, T, C) gather (glue)
    pos_emb = params['wpe'][:T]
    x = (tok_emb + pos_emb[None, :, :]).reshape(N, C)  # residual stream, f32

    for blk in params['blocks']:
        # LN1 + QKV projection fused in one tiled kernel
        qkv = ln_matmul(x, blk['ln1_g'], blk['ln1_b'],
                        blk['w_qkv'], blk['b_qkv'])   # (N, 3C) f32
        qkv = qkv.reshape(B, T, 3, nh, hd).transpose(2, 0, 3, 1, 4)  # (3,B,nh,T,hd)
        q = qkv[0].reshape(B * nh, T, hd).astype(jnp.bfloat16)
        k = qkv[1].reshape(B * nh, T, hd).astype(jnp.bfloat16)
        v = qkv[2].reshape(B * nh, T, hd).astype(jnp.bfloat16)

        y = flash_attention(q, k, v)                  # (B*nh, T, hd) f32
        y = y.reshape(B, nh, T, hd).transpose(0, 2, 1, 3).reshape(N, C)

        # out-projection + bias + residual add fused
        x = matmul_bias_residual(y, blk['w_proj'], blk['b_proj'], x)

        # LN2 + c_fc + GELU + c_proj + residual fused
        x = ln_mlp_residual(x, blk['ln2_g'], blk['ln2_b'],
                            blk['w_fc'], blk['b_fc'],
                            blk['w_fc_proj'], blk['b_fc_proj'])

    # final LayerNorm fused into the tied lm_head matmul (padded vocab)
    logits = ln_matmul(x, params['lnf_g'], params['lnf_b'], params['w_lm'])
    return logits[:, :cfg.vocab_size].reshape(B, T, cfg.vocab_size)
    # TODO(synk): cross-entropy loss branch (targets is not None) not needed
    # for forward logits.


# --------------------------- pure-JAX reference -----------------------------

def _gelu_tanh(x):
    c = math.sqrt(2.0 / math.pi)
    return 0.5 * x * (1.0 + jnp.tanh(c * (x + 0.044715 * x ** 3)))


def _ln_ref(x, g, b):
    m = jnp.mean(x, -1, keepdims=True)
    v = jnp.mean((x - m) ** 2, -1, keepdims=True)
    return (x - m) * lax.rsqrt(v + 1e-5) * g + b


def gpt_forward_ref(params, idx, cfg):
    B, T = idx.shape
    C, nh = cfg.n_embd, cfg.n_head
    hd = C // nh
    x = params['wte'][idx] + params['wpe'][:T][None]
    for blk in params['blocks']:
        xn = _ln_ref(x, blk['ln1_g'], blk['ln1_b'])
        qkv = xn @ blk['w_qkv'] + blk['b_qkv']
        q, k, v = jnp.split(qkv, 3, axis=-1)
        q = q.reshape(B, T, nh, hd)
        k = k.reshape(B, T, nh, hd)
        v = v.reshape(B, T, nh, hd)
        att = jnp.einsum('bqhd,bkhd->bhqk', q, k) / math.sqrt(hd)
        mask = jnp.tril(jnp.ones((T, T), bool))[None, None]
        att = jnp.where(mask, att, -1e30)
        p = jax.nn.softmax(att, axis=-1)
        y = jnp.einsum('bhqk,bkhd->bqhd', p, v).reshape(B, T, C)
        x = x + y @ blk['w_proj'] + blk['b_proj']
        xn = _ln_ref(x, blk['ln2_g'], blk['ln2_b'])
        h = _gelu_tanh(xn @ blk['w_fc'] + blk['b_fc'])
        x = x + h @ blk['w_fc_proj'] + blk['b_fc_proj']
    xf = _ln_ref(x, params['lnf_g'], params['lnf_b'])
    return xf @ params['wte'].T


# --------------------------------- main -------------------------------------

if __name__ == "__main__":
    # Small demo shapes (real GPT-2 shapes use the same code paths/tiling).
    cfg = GPTConfig(block_size=16, vocab_size=128, n_layer=2, n_head=4, n_embd=32)
    key = jax.random.PRNGKey(0)
    pkey, ikey = jax.random.split(key)

    master = init_params(pkey, cfg)
    run_params = prepare_params(master, cfg)

    B, T = 2, 8
    idx = jax.random.randint(ikey, (B, T), 0, cfg.vocab_size, dtype=jnp.int32)

    fwd = jax.jit(functools.partial(gpt_forward, cfg=cfg))
    logits = jax.block_until_ready(fwd(run_params, idx))

    assert logits.shape == (B, T, cfg.vocab_size)
    assert logits.dtype == jnp.float32

    ref = jax.block_until_ready(gpt_forward_ref(master, idx, cfg))
    assert jnp.allclose(logits, ref, rtol=2e-2, atol=2e-2), \
        "mismatch vs pure-JAX reference"

    print("KERNEL_OK")
</pallas_src>

<mosaic_0001>
module attributes {stable_mosaic.version = 11 : i64} {
  func.func @_ln_matmul_bias_kernel(%arg0: i32, %arg1: i32, %arg2: memref<16x32xf32, #tpu.memory_space<vmem>>, %arg3: memref<1x32xf32, #tpu.memory_space<vmem>>, %arg4: memref<1x32xf32, #tpu.memory_space<vmem>>, %arg5: memref<32x96xbf16, #tpu.memory_space<vmem>>, %arg6: memref<1x96xf32, #tpu.memory_space<vmem>>, %arg7: memref<16x96xf32, #tpu.memory_space<vmem>>) attributes {dimension_semantics = [#tpu.dimension_semantics<parallel>, #tpu.dimension_semantics<parallel>], iteration_bounds = array<i64: 1, 1>, scalar_prefetch = 0 : i64, scratch_operands = 0 : i64, tpu.core_type = #tpu.core_type<tc>, window_params = [{transform_indices = @transform_0, window_bounds = array<i64: 16, 32>}, {pipeline_mode = #tpu.pipeline_mode<synchronous>, transform_indices = @transform_1, window_bounds = array<i64: 1, 32>}, {pipeline_mode = #tpu.pipeline_mode<synchronous>, transform_indices = @transform_2, window_bounds = array<i64: 1, 32>}, {transform_indices = @transform_3, window_bounds = array<i64: 32, 96>}, {transform_indices = @transform_4, window_bounds = array<i64: 1, 96>}, {transform_indices = @transform_5, window_bounds = array<i64: 16, 96>}]} {
    %c0 = arith.constant 0 : index
    %c0_0 = arith.constant 0 : index
    %0 = vector.load %arg2[%c0, %c0_0] : memref<16x32xf32, #tpu.memory_space<vmem>>, vector<16x32xf32>
    %c0_1 = arith.constant 0 : index
    %c0_2 = arith.constant 0 : index
    %1 = vector.load %arg3[%c0_1, %c0_2] : memref<1x32xf32, #tpu.memory_space<vmem>>, vector<1x32xf32>
    %c0_3 = arith.constant 0 : index
    %c0_4 = arith.constant 0 : index
    %2 = vector.load %arg4[%c0_3, %c0_4] : memref<1x32xf32, #tpu.memory_space<vmem>>, vector<1x32xf32>
    %cst = arith.constant dense<0.000000e+00> : vector<16xf32>
    %3 = vector.multi_reduction <add>, %0, %cst [1] : vector<16x32xf32> to vector<16xf32>
    %4 = vector.shape_cast %3 : vector<16xf32> to vector<16x1xf32>
    %cst_5 = arith.constant 3.200000e+01 : f32
    %5 = vector.broadcast %cst_5 : f32 to vector<16x1xf32>
    %6 = arith.divf %4, %5 : vector<16x1xf32>
    %7 = vector.broadcast %6 : vector<16x1xf32> to vector<16x32xf32>
    %8 = arith.subf %0, %7 : vector<16x32xf32>
    %9 = arith.mulf %8, %8 : vector<16x32xf32>
    %cst_6 = arith.constant dense<0.000000e+00> : vector<16xf32>
    %10 = vector.multi_reduction <add>, %9, %cst_6 [1] : vector<16x32xf32> to vector<16xf32>
    %11 = vector.shape_cast %10 : vector<16xf32> to vector<16x1xf32>
    %cst_7 = arith.constant 3.200000e+01 : f32
    %12 = vector.broadcast %cst_7 : f32 to vector<16x1xf32>
    %13 = arith.divf %11, %12 : vector<16x1xf32>
    %14 = vector.broadcast %6 : vector<16x1xf32> to vector<16x32xf32>
    %15 = arith.subf %0, %14 : vector<16x32xf32>
    %cst_8 = arith.constant 9.99999974E-6 : f32
    %16 = vector.broadcast %cst_8 : f32 to vector<16x1xf32>
    %17 = arith.addf %13, %16 : vector<16x1xf32>
    %18 = math.rsqrt %17 : vector<16x1xf32>
    %19 = vector.broadcast %18 : vector<16x1xf32> to vector<16x32xf32>
    %20 = arith.mulf %15, %19 : vector<16x32xf32>
    %21 = vector.broadcast %1 : vector<1x32xf32> to vector<16x32xf32>
    %22 = arith.mulf %20, %21 : vector<16x32xf32>
    %23 = vector.broadcast %2 : vector<1x32xf32> to vector<16x32xf32>
    %24 = arith.addf %22, %23 : vector<16x32xf32>
    %25 = arith.truncf %24 : vector<16x32xf32> to vector<16x32xbf16>
    %c0_9 = arith.constant 0 : index
    %c0_10 = arith.constant 0 : index
    %26 = vector.load %arg5[%c0_9, %c0_10] : memref<32x96xbf16, #tpu.memory_space<vmem>>, vector<32x96xbf16>
    %cst_11 = arith.constant dense<0.000000e+00> : vector<16x96xf32>
    %27 = tpu.matmul %25, %26, %cst_11 {dimension_numbers = #tpu.dot_dimension_numbers<[1], [0], [0], [1], [0, 0, 1, 1], [], []>} : vector<16x32xbf16>, vector<32x96xbf16>, vector<16x96xf32> -> vector<16x96xf32>
    %c0_12 = arith.constant 0 : index
    %c0_13 = arith.constant 0 : index
    %28 = vector.load %arg6[%c0_12, %c0_13] : memref<1x96xf32, #tpu.memory_space<vmem>>, vector<1x96xf32>
    %29 = vector.broadcast %28 : vector<1x96xf32> to vector<16x96xf32>
    %30 = arith.addf %27, %29 : vector<16x96xf32>
    %c0_14 = arith.constant 0 : index
    %c0_15 = arith.constant 0 : index
    %31 = vector.load %arg7[%c0_14, %c0_15] : memref<16x96xf32, #tpu.memory_space<vmem>>, vector<16x96xf32>
    tpu.vector_store %arg7[%c0_14, %c0_15], %30 {strides = array<i32>} : memref<16x96xf32, #tpu.memory_space<vmem>>, vector<16x96xf32>,
    return
  }
  func.func @transform_0(%arg0: i32, %arg1: i32) -> (i32, i32) {
    %c0_i32 = arith.constant 0 : i32
    %c0_i32_0 = arith.constant 0 : i32
    return %arg0, %c0_i32 : i32, i32
  }
  func.func @transform_1(%arg0: i32, %arg1: i32) -> (i32, i32) {
    %c0_i32 = arith.constant 0 : i32
    %c0_i32_0 = arith.constant 0 : i32
    %c0_i32_1 = arith.constant 0 : i32
    return %c0_i32, %c0_i32_0 : i32, i32
  }
  func.func @transform_2(%arg0: i32, %arg1: i32) -> (i32, i32) {
    %c0_i32 = arith.constant 0 : i32
    %c0_i32_0 = arith.constant 0 : i32
    %c0_i32_1 = arith.constant 0 : i32
    return %c0_i32, %c0_i32_0 : i32, i32
  }
  func.func @transform_3(%arg0: i32, %arg1: i32) -> (i32, i32) {
    %c0_i32 = arith.constant 0 : i32
    %c0_i32_0 = arith.constant 0 : i32
    return %c0_i32, %arg1 : i32, i32
  }
  func.func @transform_4(%arg0: i32, %arg1: i32) -> (i32, i32) {
    %c0_i32 = arith.constant 0 : i32
    %c0_i32_0 = arith.constant 0 : i32
    return %c0_i32, %arg1 : i32, i32
  }
  func.func @transform_5(%arg0: i32, %arg1: i32) -> (i32, i32) {
    %c0_i32 = arith.constant 0 : i32
    return %arg0, %arg1 : i32, i32
  }
}

module attributes {stable_mosaic.version = 11 : i64} {
  func.func @_flash_attn_kernel(%arg0: i32, %arg1: i32, %arg2: i32, %arg3: memref<1x8x8xbf16, #tpu.memory_space<vmem>>, %arg4: memref<1x8x8xbf16, #tpu.memory_space<vmem>>, %arg5: memref<1x8x8xbf16, #tpu.memory_space<vmem>>, %arg6: memref<1x8x8xf32, #tpu.memory_space<vmem>>, %arg7: memref<8x1xf32, #tpu.memory_space<vmem>>, %arg8: memref<8x1xf32, #tpu.memory_space<vmem>>, %arg9: memref<8x8xf32, #tpu.memory_space<vmem>>) attributes {dimension_semantics = [#tpu.dimension_semantics<parallel>, #tpu.dimension_semantics<parallel>, #tpu.dimension_semantics<arbitrary>], iteration_bounds = array<i64: 8, 1, 1>, scalar_prefetch = 0 : i64, scratch_operands = 3 : i64, tpu.core_type = #tpu.core_type<tc>, window_params = [{transform_indices = @transform_0, window_bounds = array<i64: 1, 8, 8>}, {transform_indices = @transform_1, window_bounds = array<i64: 1, 8, 8>}, {transform_indices = @transform_2, window_bounds = array<i64: 1, 8, 8>}, {transform_indices = @transform_3, window_bounds = array<i64: 1, 8, 8>}]} {
    %c8_i32 = arith.constant 8 : i32
    %0 = arith.muli %arg1, %c8_i32 : i32
    %c8_i32_0 = arith.constant 8 : i32
    %1 = arith.muli %arg2, %c8_i32_0 : i32
    %c0_i32 = arith.constant 0 : i32
    %2 = arith.cmpi eq, %arg2, %c0_i32 : i32
    %3 = arith.extui %2 : i1 to i32
    %c0_i32_1 = arith.constant 0 : i32
    %4 = arith.cmpi ne, %3, %c0_i32_1 : i32
    scf.if %4 {
      %cst = arith.constant 0xFF800000 : f32
      %27 = vector.broadcast %cst : f32 to vector<8x1xf32>
      %c0_18 = arith.constant 0 : index
      %c0_19 = arith.constant 0 : index
      %28 = vector.load %arg7[%c0_18, %c0_19] : memref<8x1xf32, #tpu.memory_space<vmem>>, vector<8x1xf32>
      tpu.vector_store %arg7[%c0_18, %c0_19], %27 {strides = array<i32>} : memref<8x1xf32, #tpu.memory_space<vmem>>, vector<8x1xf32>,
      %cst_20 = arith.constant 0.000000e+00 : f32
      %29 = vector.broadcast %cst_20 : f32 to vector<8x1xf32>
      %c0_21 = arith.constant 0 : index
      %c0_22 = arith.constant 0 : index
      %30 = vector.load %arg8[%c0_21, %c0_22] : memref<8x1xf32, #tpu.memory_space<vmem>>, vector<8x1xf32>
      tpu.vector_store %arg8[%c0_21, %c0_22], %29 {strides = array<i32>} : memref<8x1xf32, #tpu.memory_space<vmem>>, vector<8x1xf32>,
      %cst_23 = arith.constant 0.000000e+00 : f32
      %31 = vector.broadcast %cst_23 : f32 to vector<8x8xf32>
      %c0_24 = arith.constant 0 : index
      %c0_25 = arith.constant 0 : index
      %32 = vector.load %arg9[%c0_24, %c0_25] : memref<8x8xf32, #tpu.memory_space<vmem>>, vector<8x8xf32>
      tpu.vector_store %arg9[%c0_24, %c0_25], %31 {strides = array<i32>} : memref<8x8xf32, #tpu.memory_space<vmem>>, vector<8x8xf32>,
    } else {
    }
    %c0 = arith.constant 0 : index
    %c0_2 = arith.constant 0 : index
    %c0_3 = arith.constant 0 : index
    %5 = vector.load %arg3[%c0, %c0_2, %c0_3] : memref<1x8x8xbf16, #tpu.memory_space<vmem>>, vector<1x8x8xbf16>
    %6 = vector.shape_cast %5 : vector<1x8x8xbf16> to vector<8x8xbf16>
    %c0_4 = arith.constant 0 : index
    %c0_5 = arith.constant 0 : index
    %c0_6 = arith.constant 0 : index
    %7 = vector.load %arg4[%c0_4, %c0_5, %c0_6] : memref<1x8x8xbf16, #tpu.memory_space<vmem>>, vector<1x8x8xbf16>
    %8 = vector.shape_cast %7 : vector<1x8x8xbf16> to vector<8x8xbf16>
    %c0_7 = arith.constant 0 : index
    %c0_8 = arith.constant 0 : index
    %c0_9 = arith.constant 0 : index
    %9 = vector.load %arg5[%c0_7, %c0_8, %c0_9] : memref<1x8x8xbf16, #tpu.memory_space<vmem>>, vector<1x8x8xbf16>
    %10 = vector.shape_cast %9 : vector<1x8x8xbf16> to vector<8x8xbf16>
    %c8_i32_10 = arith.constant 8 : i32
    %11 = arith.addi %1, %c8_i32_10 : i32
    %c1_i32 = arith.constant 1 : i32
    %12 = arith.subi %11, %c1_i32 : i32
    %13 = arith.cmpi sle, %12, %0 : i32
    %c8_i32_11 = arith.constant 8 : i32
    %14 = arith.addi %0, %c8_i32_11 : i32
    %c1_i32_12 = arith.constant 1 : i32
    %15 = arith.subi %14, %c1_i32_12 : i32
    %16 = arith.cmpi sgt, %1, %15 : i32
    %true = arith.constant true
    %17 = arith.xori %13, %true : i1
    %true_13 = arith.constant true
    %18 = arith.xori %16, %true_13 : i1
    %19 = arith.andi %17, %18 : i1
    %20 = arith.extui %13 : i1 to i32
    %c0_i32_14 = arith.constant 0 : i32
    %21 = arith.cmpi ne, %20, %c0_i32_14 : i32
    scf.if %21 {
      %cst = arith.constant dense<0.000000e+00> : vector<8x8xf32>
      %27 = tpu.matmul %6, %8, %cst {dimension_numbers = #tpu.dot_dimension_numbers<[1], [1], [0], [0], [0, 0, 1, 0], [], []>} : vector<8x8xbf16>, vector<8x8xbf16>, vector<8x8xf32> -> vector<8x8xf32>
      %cst_18 = arith.constant 0.353553385 : f32
      %28 = vector.broadcast %cst_18 : f32 to vector<8x8xf32>
      %29 = arith.mulf %27, %28 : vector<8x8xf32>
      %c0_19 = arith.constant 0 : index
      %c0_20 = arith.constant 0 : index
      %30 = vector.load %arg7[%c0_19, %c0_20] : memref<8x1xf32, #tpu.memory_space<vmem>>, vector<8x1xf32>
      %cst_21 = arith.constant dense<0xFF800000> : vector<8xf32>
      %31 = vector.multi_reduction <maximumf>, %29, %cst_21 [1] : vector<8x8xf32> to vector<8xf32>
      %32 = vector.shape_cast %31 : vector<8xf32> to vector<8x1xf32>
      %33 = arith.maximumf %30, %32 : vector<8x1xf32>
      %34 = arith.subf %30, %33 : vector<8x1xf32>
      %35 = math.exp %34 : vector<8x1xf32>
      %36 = vector.broadcast %33 : vector<8x1xf32> to vector<8x8xf32>
      %37 = arith.subf %29, %36 : vector<8x8xf32>
      %38 = math.exp %37 : vector<8x8xf32>
      %c0_22 = arith.constant 0 : index
      %c0_23 = arith.constant 0 : index
      %39 = vector.load %arg8[%c0_22, %c0_23] : memref<8x1xf32, #tpu.memory_space<vmem>>, vector<8x1xf32>
      %40 = arith.mulf %35, %39 : vector<8x1xf32>
      %cst_24 = arith.constant dense<0.000000e+00> : vector<8xf32>
      %41 = vector.multi_reduction <add>, %38, %cst_24 [1] : vector<8x8xf32> to vector<8xf32>
      %42 = vector.shape_cast %41 : vector<8xf32> to vector<8x1xf32>
      %43 = arith.addf %40, %42 : vector<8x1xf32>
      %c0_25 = arith.constant 0 : index
      %c0_26 = arith.constant 0 : index
      %44 = vector.load %arg8[%c0_25, %c0_26] : memref<8x1xf32, #tpu.memory_space<vmem>>, vector<8x1xf32>
      tpu.vector_store %arg8[%c0_25, %c0_26], %43 {strides = array<i32>} : memref<8x1xf32, #tpu.memory_space<vmem>>, vector<8x1xf32>,
      %c0_27 = arith.constant 0 : index
      %c0_28 = arith.constant 0 : index
      %45 = vector.load %arg9[%c0_27, %c0_28] : memref<8x8xf32, #tpu.memory_space<vmem>>, vector<8x8xf32>
      %46 = vector.broadcast %35 : vector<8x1xf32> to vector<8x8xf32>
      %47 = arith.mulf %46, %45 : vector<8x8xf32>
      %48 = arith.truncf %38 : vector<8x8xf32> to vector<8x8xbf16>
      %cst_29 = arith.constant dense<0.000000e+00> : vector<8x8xf32>
      %49 = tpu.matmul %48, %10, %cst_29 {dimension_numbers = #tpu.dot_dimension_numbers<[1], [0], [0], [1], [0, 0, 1, 1], [], []>} : vector<8x8xbf16>, vector<8x8xbf16>, vector<8x8xf32> -> vector<8x8xf32>
      %50 = arith.addf %47, %49 : vector<8x8xf32>
      %c0_30 = arith.constant 0 : index
      %c0_31 = arith.constant 0 : index
      %51 = vector.load %arg9[%c0_30, %c0_31] : memref<8x8xf32, #tpu.memory_space<vmem>>, vector<8x8xf32>
      tpu.vector_store %arg9[%c0_30, %c0_31], %50 {strides = array<i32>} : memref<8x8xf32, #tpu.memory_space<vmem>>, vector<8x8xf32>,
      %c0_32 = arith.constant 0 : index
      %c0_33 = arith.constant 0 : index
      %52 = vector.load %arg7[%c0_32, %c0_33] : memref<8x1xf32, #tpu.memory_space<vmem>>, vector<8x1xf32>
      tpu.vector_store %arg7[%c0_32, %c0_33], %33 {strides = array<i32>} : memref<8x1xf32, #tpu.memory_space<vmem>>, vector<8x1xf32>,
    } else {
    }
    %22 = arith.extui %19 : i1 to i32
    %c0_i32_15 = arith.constant 0 : i32
    %23 = arith.cmpi ne, %22, %c0_i32_15 : i32
    scf.if %23 {
      %cst = arith.constant dense<0.000000e+00> : vector<8x8xf32>
      %27 = tpu.matmul %6, %8, %cst {dimension_numbers = #tpu.dot_dimension_numbers<[1], [1], [0], [0], [0, 0, 1, 0], [], []>} : vector<8x8xbf16>, vector<8x8xbf16>, vector<8x8xf32> -> vector<8x8xf32>
      %cst_18 = arith.constant 0.353553385 : f32
      %28 = vector.broadcast %cst_18 : f32 to vector<8x8xf32>
      %29 = arith.mulf %27, %28 : vector<8x8xf32>
      %30 = tpu.iota {dimensions = array<i32: 0>} : vector<8x8xi32>
      %31 = vector.broadcast %0 : i32 to vector<8x8xi32>
      %32 = arith.addi %30, %31 : vector<8x8xi32>
      %33 = tpu.iota {dimensions = array<i32: 1>} : vector<8x8xi32>
      %34 = vector.broadcast %1 : i32 to vector<8x8xi32>
      %35 = arith.addi %33, %34 : vector<8x8xi32>
      %36 = arith.cmpi sle, %35, %32 : vector<8x8xi32>
      %cst_19 = arith.constant -1.000000e+30 : f32
      %37 = vector.broadcast %cst_19 : f32 to vector<8x8xf32>
      %38 = arith.select %36, %29, %37 : vector<8x8xi1>, vector<8x8xf32>
      %c0_20 = arith.constant 0 : index
      %c0_21 = arith.constant 0 : index
      %39 = vector.load %arg7[%c0_20, %c0_21] : memref<8x1xf32, #tpu.memory_space<vmem>>, vector<8x1xf32>
      %cst_22 = arith.constant dense<0xFF800000> : vector<8xf32>
      %40 = vector.multi_reduction <maximumf>, %38, %cst_22 [1] : vector<8x8xf32> to vector<8xf32>
      %41 = vector.shape_cast %40 : vector<8xf32> to vector<8x1xf32>
      %42 = arith.maximumf %39, %41 : vector<8x1xf32>
      %43 = arith.subf %39, %42 : vector<8x1xf32>
      %44 = math.exp %43 : vector<8x1xf32>
      %45 = vector.broadcast %42 : vector<8x1xf32> to vector<8x8xf32>
      %46 = arith.subf %38, %45 : vector<8x8xf32>
      %47 = math.exp %46 : vector<8x8xf32>
      %c0_23 = arith.constant 0 : index
      %c0_24 = arith.constant 0 : index
      %48 = vector.load %arg8[%c0_23, %c0_24] : memref<8x1xf32, #tpu.memory_space<vmem>>, vector<8x1xf32>
      %49 = arith.mulf %44, %48 : vector<8x1xf32>
      %cst_25 = arith.constant dense<0.000000e+00> : vector<8xf32>
      %50 = vector.multi_reduction <add>, %47, %cst_25 [1] : vector<8x8xf32> to vector<8xf32>
      %51 = vector.shape_cast %50 : vector<8xf32> to vector<8x1xf32>
      %52 = arith.addf %49, %51 : vector<8x1xf32>
      %c0_26 = arith.constant 0 : index
      %c0_27 = arith.constant 0 : index
      %53 = vector.load %arg8[%c0_26, %c0_27] : memref<8x1xf32, #tpu.memory_space<vmem>>, vector<8x1xf32>
      tpu.vector_store %arg8[%c0_26, %c0_27], %52 {strides = array<i32>} : memref<8x1xf32, #tpu.memory_space<vmem>>, vector<8x1xf32>,
      %c0_28 = arith.constant 0 : index
      %c0_29 = arith.constant 0 : index
      %54 = vector.load %arg9[%c0_28, %c0_29] : memref<8x8xf32, #tpu.memory_space<vmem>>, vector<8x8xf32>
      %55 = vector.broadcast %44 : vector<8x1xf32> to vector<8x8xf32>
      %56 = arith.mulf %55, %54 : vector<8x8xf32>
      %57 = arith.truncf %47 : vector<8x8xf32> to vector<8x8xbf16>
      %cst_30 = arith.constant dense<0.000000e+00> : vector<8x8xf32>
      %58 = tpu.matmul %57, %10, %cst_30 {dimension_numbers = #tpu.dot_dimension_numbers<[1], [0], [0], [1], [0, 0, 1, 1], [], []>} : vector<8x8xbf16>, vector<8x8xbf16>, vector<8x8xf32> -> vector<8x8xf32>
      %59 = arith.addf %56, %58 : vector<8x8xf32>
      %c0_31 = arith.constant 0 : index
      %c0_32 = arith.constant 0 : index
      %60 = vector.load %arg9[%c0_31, %c0_32] : memref<8x8xf32, #tpu.memory_space<vmem>>, vector<8x8xf32>
      tpu.vector_store %arg9[%c0_31, %c0_32], %59 {strides = array<i32>} : memref<8x8xf32, #tpu.memory_space<vmem>>, vector<8x8xf32>,
      %c0_33 = arith.constant 0 : index
      %c0_34 = arith.constant 0 : index
      %61 = vector.load %arg7[%c0_33, %c0_34] : memref<8x1xf32, #tpu.memory_space<vmem>>, vector<8x1xf32>
      tpu.vector_store %arg7[%c0_33, %c0_34], %42 {strides = array<i32>} : memref<8x1xf32, #tpu.memory_space<vmem>>, vector<8x1xf32>,
    } else {
    }
    %c0_i32_16 = arith.constant 0 : i32
    %24 = arith.cmpi eq, %arg2, %c0_i32_16 : i32
    %25 = arith.extui %24 : i1 to i32
    %c0_i32_17 = arith.constant 0 : i32
    %26 = arith.cmpi ne, %25, %c0_i32_17 : i32
    scf.if %26 {
      %c0_18 = arith.constant 0 : index
      %c0_19 = arith.constant 0 : index
      %27 = vector.load %arg8[%c0_18, %c0_19] : memref<8x1xf32, #tpu.memory_space<vmem>>, vector<8x1xf32>
      %28 = tpu.reciprocal %27 {approx = true} : vector<8x1xf32> -> vector<8x1xf32>
      %c0_20 = arith.constant 0 : index
      %c0_21 = arith.constant 0 : index
      %29 = vector.load %arg9[%c0_20, %c0_21] : memref<8x8xf32, #tpu.memory_space<vmem>>, vector<8x8xf32>
      %30 = vector.broadcast %28 : vector<8x1xf32> to vector<8x8xf32>
      %31 = arith.mulf %29, %30 : vector<8x8xf32>
      %c0_22 = arith.constant 0 : index
      %c0_23 = arith.constant 0 : index
      %c0_24 = arith.constant 0 : index
      %32 = vector.load %arg6[%c0_22, %c0_23, %c0_24] : memref<1x8x8xf32, #tpu.memory_space<vmem>>, vector<1x8x8xf32>
      %33 = vector.shape_cast %32 : vector<1x8x8xf32> to vector<8x8xf32>
      %34 = vector.shape_cast %31 : vector<8x8xf32> to vector<1x8x8xf32>
      tpu.vector_store %arg6[%c0_22, %c0_23, %c0_24], %34 {strides = array<i32>} : memref<1x8x8xf32, #tpu.memory_space<vmem>>, vector<1x8x8xf32>,
    } else {
    }
    return
  }
  func.func @transform_0(%arg0: i32, %arg1: i32, %arg2: i32) -> (i32, i32, i32) {
    %c0_i32 = arith.constant 0 : i32
    %c0_i32_0 = arith.constant 0 : i32
    return %arg0, %arg1, %c0_i32 : i32, i32, i32
  }
  func.func @transform_1(%arg0: i32, %arg1: i32, %arg2: i32) -> (i32, i32, i32) {
    %c0_i32 = arith.constant 0 : i32
    %c0_i32_0 = arith.constant 0 : i32
    return %arg0, %arg2, %c0_i32 : i32, i32, i32
  }
  func.func @transform_2(%arg0: i32, %arg1: i32, %arg2: i32) -> (i32, i32, i32) {
    %c0_i32 = arith.constant 0 : i32
    %c0_i32_0 = arith.constant 0 : i32
    return %arg0, %arg2, %c0_i32 : i32, i32, i32
  }
  func.func @transform_3(%arg0: i32, %arg1: i32, %arg2: i32) -> (i32, i32, i32) {
    %c0_i32 = arith.constant 0 : i32
    %c0_i32_0 = arith.constant 0 : i32
    return %arg0, %arg1, %c0_i32 : i32, i32, i32
  }
}

module attributes {stable_mosaic.version = 11 : i64} {
  func.func @_ln_mlp_residual_kernel(%arg0: i32, %arg1: memref<16x32xf32, #tpu.memory_space<vmem>>, %arg2: memref<1x32xf32, #tpu.memory_space<vmem>>, %arg3: memref<1x32xf32, #tpu.memory_space<vmem>>, %arg4: memref<32x128xbf16, #tpu.memory_space<vmem>>, %arg5: memref<1x128xf32, #tpu.memory_space<vmem>>, %arg6: memref<128x32xbf16, #tpu.memory_space<vmem>>, %arg7: memref<1x32xf32, #tpu.memory_space<vmem>>, %arg8: memref<16x32xf32, #tpu.memory_space<vmem>>) attributes {dimension_semantics = [#tpu.dimension_semantics<parallel>], iteration_bounds = array<i64: 1>, scalar_prefetch = 0 : i64, scratch_operands = 0 : i64, tpu.core_type = #tpu.core_type<tc>, window_params = [{transform_indices = @transform_0, window_bounds = array<i64: 16, 32>}, {pipeline_mode = #tpu.pipeline_mode<synchronous>, transform_indices = @transform_1, window_bounds = array<i64: 1, 32>}, {pipeline_mode = #tpu.pipeline_mode<synchronous>, transform_indices = @transform_2, window_bounds = array<i64: 1, 32>}, {pipeline_mode = #tpu.pipeline_mode<synchronous>, transform_indices = @transform_3, window_bounds = array<i64: 32, 128>}, {pipeline_mode = #tpu.pipeline_mode<synchronous>, transform_indices = @transform_4, window_bounds = array<i64: 1, 128>}, {pipeline_mode = #tpu.pipeline_mode<synchronous>, transform_indices = @transform_5, window_bounds = array<i64: 128, 32>}, {pipeline_mode = #tpu.pipeline_mode<synchronous>, transform_indices = @transform_6, window_bounds = array<i64: 1, 32>}, {transform_indices = @transform_7, window_bounds = array<i64: 16, 32>}]} {
    %c0 = arith.constant 0 : index
    %c0_0 = arith.constant 0 : index
    %0 = vector.load %arg1[%c0, %c0_0] : memref<16x32xf32, #tpu.memory_space<vmem>>, vector<16x32xf32>
    %c0_1 = arith.constant 0 : index
    %c0_2 = arith.constant 0 : index
    %1 = vector.load %arg2[%c0_1, %c0_2] : memref<1x32xf32, #tpu.memory_space<vmem>>, vector<1x32xf32>
    %c0_3 = arith.constant 0 : index
    %c0_4 = arith.constant 0 : index
    %2 = vector.load %arg3[%c0_3, %c0_4] : memref<1x32xf32, #tpu.memory_space<vmem>>, vector<1x32xf32>
    %cst = arith.constant dense<0.000000e+00> : vector<16xf32>
    %3 = vector.multi_reduction <add>, %0, %cst [1] : vector<16x32xf32> to vector<16xf32>
    %4 = vector.shape_cast %3 : vector<16xf32> to vector<16x1xf32>
    %cst_5 = arith.constant 3.200000e+01 : f32
    %5 = vector.broadcast %cst_5 : f32 to vector<16x1xf32>
    %6 = arith.divf %4, %5 : vector<16x1xf32>
    %7 = vector.broadcast %6 : vector<16x1xf32> to vector<16x32xf32>
    %8 = arith.subf %0, %7 : vector<16x32xf32>
    %9 = arith.mulf %8, %8 : vector<16x32xf32>
    %cst_6 = arith.constant dense<0.000000e+00> : vector<16xf32>
    %10 = vector.multi_reduction <add>, %9, %cst_6 [1] : vector<16x32xf32> to vector<16xf32>
    %11 = vector.shape_cast %10 : vector<16xf32> to vector<16x1xf32>
    %cst_7 = arith.constant 3.200000e+01 : f32
    %12 = vector.broadcast %cst_7 : f32 to vector<16x1xf32>
    %13 = arith.divf %11, %12 : vector<16x1xf32>
    %14 = vector.broadcast %6 : vector<16x1xf32> to vector<16x32xf32>
    %15 = arith.subf %0, %14 : vector<16x32xf32>
    %cst_8 = arith.constant 9.99999974E-6 : f32
    %16 = vector.broadcast %cst_8 : f32 to vector<16x1xf32>
    %17 = arith.addf %13, %16 : vector<16x1xf32>
    %18 = math.rsqrt %17 : vector<16x1xf32>
    %19 = vector.broadcast %18 : vector<16x1xf32> to vector<16x32xf32>
    %20 = arith.mulf %15, %19 : vector<16x32xf32>
    %21 = vector.broadcast %1 : vector<1x32xf32> to vector<16x32xf32>
    %22 = arith.mulf %20, %21 : vector<16x32xf32>
    %23 = vector.broadcast %2 : vector<1x32xf32> to vector<16x32xf32>
    %24 = arith.addf %22, %23 : vector<16x32xf32>
    %25 = arith.truncf %24 : vector<16x32xf32> to vector<16x32xbf16>
    %c0_9 = arith.constant 0 : index
    %c0_10 = arith.constant 0 : index
    %26 = vector.load %arg4[%c0_9, %c0_10] : memref<32x128xbf16, #tpu.memory_space<vmem>>, vector<32x128xbf16>
    %cst_11 = arith.constant dense<0.000000e+00> : vector<16x128xf32>
    %27 = tpu.matmul %25, %26, %cst_11 {dimension_numbers = #tpu.dot_dimension_numbers<[1], [0], [0], [1], [0, 0, 1, 1], [], []>} : vector<16x32xbf16>, vector<32x128xbf16>, vector<16x128xf32> -> vector<16x128xf32>
    %c0_12 = arith.constant 0 : index
    %c0_13 = arith.constant 0 : index
    %28 = vector.load %arg5[%c0_12, %c0_13] : memref<1x128xf32, #tpu.memory_space<vmem>>, vector<1x128xf32>
    %29 = vector.broadcast %28 : vector<1x128xf32> to vector<16x128xf32>
    %30 = arith.addf %27, %29 : vector<16x128xf32>
    %cst_14 = arith.constant 5.000000e-01 : f32
    %31 = vector.broadcast %cst_14 : f32 to vector<16x128xf32>
    %32 = arith.mulf %31, %30 : vector<16x128xf32>
    %cst_15 = arith.constant 4.471500e-02 : f32
    %33 = vector.broadcast %cst_15 : f32 to vector<16x128xf32>
    %34 = arith.mulf %33, %30 : vector<16x128xf32>
    %35 = arith.mulf %34, %30 : vector<16x128xf32>
    %36 = arith.mulf %35, %30 : vector<16x128xf32>
    %37 = arith.addf %30, %36 : vector<16x128xf32>
    %cst_16 = arith.constant 0.797884583 : f32
    %38 = vector.broadcast %cst_16 : f32 to vector<16x128xf32>
    %39 = arith.mulf %38, %37 : vector<16x128xf32>
    %40 = math.tanh %39 : vector<16x128xf32>
    %cst_17 = arith.constant 1.000000e+00 : f32
    %41 = vector.broadcast %cst_17 : f32 to vector<16x128xf32>
    %42 = arith.addf %41, %40 : vector<16x128xf32>
    %43 = arith.mulf %32, %42 : vector<16x128xf32>
    %44 = arith.truncf %43 : vector<16x128xf32> to vector<16x128xbf16>
    %c0_18 = arith.constant 0 : index
    %c0_19 = arith.constant 0 : index
    %45 = vector.load %arg6[%c0_18, %c0_19] : memref<128x32xbf16, #tpu.memory_space<vmem>>, vector<128x32xbf16>
    %cst_20 = arith.constant dense<0.000000e+00> : vector<16x32xf32>
    %46 = tpu.matmul %44, %45, %cst_20 {dimension_numbers = #tpu.dot_dimension_numbers<[1], [0], [0], [1], [0, 0, 1, 1], [], []>} : vector<16x128xbf16>, vector<128x32xbf16>, vector<16x32xf32> -> vector<16x32xf32>
    %47 = arith.addf %0, %46 : vector<16x32xf32>
    %c0_21 = arith.constant 0 : index
    %c0_22 = arith.constant 0 : index
    %48 = vector.load %arg7[%c0_21, %c0_22] : memref<1x32xf32, #tpu.memory_space<vmem>>, vector<1x32xf32>
    %49 = vector.broadcast %48 : vector<1x32xf32> to vector<16x32xf32>
    %50 = arith.addf %47, %49 : vector<16x32xf32>
    %c0_23 = arith.constant 0 : index
    %c0_24 = arith.constant 0 : index
    %51 = vector.load %arg8[%c0_23, %c0_24] : memref<16x32xf32, #tpu.memory_space<vmem>>, vector<16x32xf32>
    tpu.vector_store %arg8[%c0_23, %c0_24], %50 {strides = array<i32>} : memref<16x32xf32, #tpu.memory_space<vmem>>, vector<16x32xf32>,
    return
  }
  func.func @transform_0(%arg0: i32) -> (i32, i32) {
    %c0_i32 = arith.constant 0 : i32
    %c0_i32_0 = arith.constant 0 : i32
    return %arg0, %c0_i32 : i32, i32
  }
  func.func @transform_1(%arg0: i32) -> (i32, i32) {
    %c0_i32 = arith.constant 0 : i32
    %c0_i32_0 = arith.constant 0 : i32
    %c0_i32_1 = arith.constant 0 : i32
    return %c0_i32, %c0_i32_0 : i32, i32
  }
  func.func @transform_2(%arg0: i32) -> (i32, i32) {
    %c0_i32 = arith.constant 0 : i32
    %c0_i32_0 = arith.constant 0 : i32
    %c0_i32_1 = arith.constant 0 : i32
    return %c0_i32, %c0_i32_0 : i32, i32
  }
  func.func @transform_3(%arg0: i32) -> (i32, i32) {
    %c0_i32 = arith.constant 0 : i32
    %c0_i32_0 = arith.constant 0 : i32
    %c0_i32_1 = arith.constant 0 : i32
    return %c0_i32, %c0_i32_0 : i32, i32
  }
  func.func @transform_4(%arg0: i32) -> (i32, i32) {
    %c0_i32 = arith.constant 0 : i32
    %c0_i32_0 = arith.constant 0 : i32
    %c0_i32_1 = arith.constant 0 : i32
    return %c0_i32, %c0_i32_0 : i32, i32
  }
  func.func @transform_5(%arg0: i32) -> (i32, i32) {
    %c0_i32 = arith.constant 0 : i32
    %c0_i32_0 = arith.constant 0 : i32
    %c0_i32_1 = arith.constant 0 : i32
    return %c0_i32, %c0_i32_0 : i32, i32
  }
  func.func @transform_6(%arg0: i32) -> (i32, i32) {
    %c0_i32 = arith.constant 0 : i32
    %c0_i32_0 = arith.constant 0 : i32
    %c0_i32_1 = arith.constant 0 : i32
    return %c0_i32, %c0_i32_0 : i32, i32
  }
  func.func @transform_7(%arg0: i32) -> (i32, i32) {
    %c0_i32 = arith.constant 0 : i32
    %c0_i32_0 = arith.constant 0 : i32
    return %arg0, %c0_i32 : i32, i32
  }
}

module attributes {stable_mosaic.version = 11 : i64} {
  func.func @_matmul_bias_residual_kernel(%arg0: i32, %arg1: i32, %arg2: memref<16x32xf32, #tpu.memory_space<vmem>>, %arg3: memref<32x32xbf16, #tpu.memory_space<vmem>>, %arg4: memref<1x32xf32, #tpu.memory_space<vmem>>, %arg5: memref<16x32xf32, #tpu.memory_space<vmem>>, %arg6: memref<16x32xf32, #tpu.memory_space<vmem>>) attributes {dimension_semantics = [#tpu.dimension_semantics<parallel>, #tpu.dimension_semantics<parallel>], iteration_bounds = array<i64: 1, 1>, scalar_prefetch = 0 : i64, scratch_operands = 0 : i64, tpu.core_type = #tpu.core_type<tc>, window_params = [{transform_indices = @transform_0, window_bounds = array<i64: 16, 32>}, {transform_indices = @transform_1, window_bounds = array<i64: 32, 32>}, {transform_indices = @transform_2, window_bounds = array<i64: 1, 32>}, {transform_indices = @transform_3, window_bounds = array<i64: 16, 32>}, {transform_indices = @transform_4, window_bounds = array<i64: 16, 32>}]} {
    %c0 = arith.constant 0 : index
    %c0_0 = arith.constant 0 : index
    %0 = vector.load %arg2[%c0, %c0_0] : memref<16x32xf32, #tpu.memory_space<vmem>>, vector<16x32xf32>
    %1 = arith.truncf %0 : vector<16x32xf32> to vector<16x32xbf16>
    %c0_1 = arith.constant 0 : index
    %c0_2 = arith.constant 0 : index
    %2 = vector.load %arg3[%c0_1, %c0_2] : memref<32x32xbf16, #tpu.memory_space<vmem>>, vector<32x32xbf16>
    %cst = arith.constant dense<0.000000e+00> : vector<16x32xf32>
    %3 = tpu.matmul %1, %2, %cst {dimension_numbers = #tpu.dot_dimension_numbers<[1], [0], [0], [1], [0, 0, 1, 1], [], []>} : vector<16x32xbf16>, vector<32x32xbf16>, vector<16x32xf32> -> vector<16x32xf32>
    %c0_3 = arith.constant 0 : index
    %c0_4 = arith.constant 0 : index
    %4 = vector.load %arg4[%c0_3, %c0_4] : memref<1x32xf32, #tpu.memory_space<vmem>>, vector<1x32xf32>
    %5 = vector.broadcast %4 : vector<1x32xf32> to vector<16x32xf32>
    %6 = arith.addf %3, %5 : vector<16x32xf32>
    %c0_5 = arith.constant 0 : index
    %c0_6 = arith.constant 0 : index
    %7 = vector.load %arg5[%c0_5, %c0_6] : memref<16x32xf32, #tpu.memory_space<vmem>>, vector<16x32xf32>
    %8 = arith.addf %6, %7 : vector<16x32xf32>
    %c0_7 = arith.constant 0 : index
    %c0_8 = arith.constant 0 : index
    %9 = vector.load %arg6[%c0_7, %c0_8] : memref<16x32xf32, #tpu.memory_space<vmem>>, vector<16x32xf32>
    tpu.vector_store %arg6[%c0_7, %c0_8], %8 {strides = array<i32>} : memref<16x32xf32, #tpu.memory_space<vmem>>, vector<16x32xf32>,
    return
  }
  func.func @transform_0(%arg0: i32, %arg1: i32) -> (i32, i32) {
    %c0_i32 = arith.constant 0 : i32
    %c0_i32_0 = arith.constant 0 : i32
    return %arg0, %c0_i32 : i32, i32
  }
  func.func @transform_1(%arg0: i32, %arg1: i32) -> (i32, i32) {
    %c0_i32 = arith.constant 0 : i32
    %c0_i32_0 = arith.constant 0 : i32
    return %c0_i32, %arg1 : i32, i32
  }
  func.func @transform_2(%arg0: i32, %arg1: i32) -> (i32, i32) {
    %c0_i32 = arith.constant 0 : i32
    %c0_i32_0 = arith.constant 0 : i32
    return %c0_i32, %arg1 : i32, i32
  }
  func.func @transform_3(%arg0: i32, %arg1: i32) -> (i32, i32) {
    %c0_i32 = arith.constant 0 : i32
    return %arg0, %arg1 : i32, i32
  }
  func.func @transform_4(%arg0: i32, %arg1: i32) -> (i32, i32) {
    %c0_i32 = arith.constant 0 : i32
    return %arg0, %arg1 : i32, i32
  }
}

module attributes {stable_mosaic.version = 11 : i64} {
  func.func @_ln_matmul_kernel(%arg0: i32, %arg1: i32, %arg2: memref<16x32xf32, #tpu.memory_space<vmem>>, %arg3: memref<1x32xf32, #tpu.memory_space<vmem>>, %arg4: memref<1x32xf32, #tpu.memory_space<vmem>>, %arg5: memref<32x128xbf16, #tpu.memory_space<vmem>>, %arg6: memref<16x128xf32, #tpu.memory_space<vmem>>) attributes {dimension_semantics = [#tpu.dimension_semantics<parallel>, #tpu.dimension_semantics<parallel>], iteration_bounds = array<i64: 1, 1>, scalar_prefetch = 0 : i64, scratch_operands = 0 : i64, tpu.core_type = #tpu.core_type<tc>, window_params = [{transform_indices = @transform_0, window_bounds = array<i64: 16, 32>}, {pipeline_mode = #tpu.pipeline_mode<synchronous>, transform_indices = @transform_1, window_bounds = array<i64: 1, 32>}, {pipeline_mode = #tpu.pipeline_mode<synchronous>, transform_indices = @transform_2, window_bounds = array<i64: 1, 32>}, {transform_indices = @transform_3, window_bounds = array<i64: 32, 128>}, {transform_indices = @transform_4, window_bounds = array<i64: 16, 128>}]} {
    %c0 = arith.constant 0 : index
    %c0_0 = arith.constant 0 : index
    %0 = vector.load %arg2[%c0, %c0_0] : memref<16x32xf32, #tpu.memory_space<vmem>>, vector<16x32xf32>
    %c0_1 = arith.constant 0 : index
    %c0_2 = arith.constant 0 : index
    %1 = vector.load %arg3[%c0_1, %c0_2] : memref<1x32xf32, #tpu.memory_space<vmem>>, vector<1x32xf32>
    %c0_3 = arith.constant 0 : index
    %c0_4 = arith.constant 0 : index
    %2 = vector.load %arg4[%c0_3, %c0_4] : memref<1x32xf32, #tpu.memory_space<vmem>>, vector<1x32xf32>
    %cst = arith.constant dense<0.000000e+00> : vector<16xf32>
    %3 = vector.multi_reduction <add>, %0, %cst [1] : vector<16x32xf32> to vector<16xf32>
    %4 = vector.shape_cast %3 : vector<16xf32> to vector<16x1xf32>
    %cst_5 = arith.constant 3.200000e+01 : f32
    %5 = vector.broadcast %cst_5 : f32 to vector<16x1xf32>
    %6 = arith.divf %4, %5 : vector<16x1xf32>
    %7 = vector.broadcast %6 : vector<16x1xf32> to vector<16x32xf32>
    %8 = arith.subf %0, %7 : vector<16x32xf32>
    %9 = arith.mulf %8, %8 : vector<16x32xf32>
    %cst_6 = arith.constant dense<0.000000e+00> : vector<16xf32>
    %10 = vector.multi_reduction <add>, %9, %cst_6 [1] : vector<16x32xf32> to vector<16xf32>
    %11 = vector.shape_cast %10 : vector<16xf32> to vector<16x1xf32>
    %cst_7 = arith.constant 3.200000e+01 : f32
    %12 = vector.broadcast %cst_7 : f32 to vector<16x1xf32>
    %13 = arith.divf %11, %12 : vector<16x1xf32>
    %14 = vector.broadcast %6 : vector<16x1xf32> to vector<16x32xf32>
    %15 = arith.subf %0, %14 : vector<16x32xf32>
    %cst_8 = arith.constant 9.99999974E-6 : f32
    %16 = vector.broadcast %cst_8 : f32 to vector<16x1xf32>
    %17 = arith.addf %13, %16 : vector<16x1xf32>
    %18 = math.rsqrt %17 : vector<16x1xf32>
    %19 = vector.broadcast %18 : vector<16x1xf32> to vector<16x32xf32>
    %20 = arith.mulf %15, %19 : vector<16x32xf32>
    %21 = vector.broadcast %1 : vector<1x32xf32> to vector<16x32xf32>
    %22 = arith.mulf %20, %21 : vector<16x32xf32>
    %23 = vector.broadcast %2 : vector<1x32xf32> to vector<16x32xf32>
    %24 = arith.addf %22, %23 : vector<16x32xf32>
    %25 = arith.truncf %24 : vector<16x32xf32> to vector<16x32xbf16>
    %c0_9 = arith.constant 0 : index
    %c0_10 = arith.constant 0 : index
    %26 = vector.load %arg5[%c0_9, %c0_10] : memref<32x128xbf16, #tpu.memory_space<vmem>>, vector<32x128xbf16>
    %cst_11 = arith.constant dense<0.000000e+00> : vector<16x128xf32>
    %27 = tpu.matmul %25, %26, %cst_11 {dimension_numbers = #tpu.dot_dimension_numbers<[1], [0], [0], [1], [0, 0, 1, 1], [], []>} : vector<16x32xbf16>, vector<32x128xbf16>, vector<16x128xf32> -> vector<16x128xf32>
    %c0_12 = arith.constant 0 : index
    %c0_13 = arith.constant 0 : index
    %28 = vector.load %arg6[%c0_12, %c0_13] : memref<16x128xf32, #tpu.memory_space<vmem>>, vector<16x128xf32>
    tpu.vector_store %arg6[%c0_12, %c0_13], %27 {strides = array<i32>} : memref<16x128xf32, #tpu.memory_space<vmem>>, vector<16x128xf32>,
    return
  }
  func.func @transform_0(%arg0: i32, %arg1: i32) -> (i32, i32) {
    %c0_i32 = arith.constant 0 : i32
    %c0_i32_0 = arith.constant 0 : i32
    return %arg0, %c0_i32 : i32, i32
  }
  func.func @transform_1(%arg0: i32, %arg1: i32) -> (i32, i32) {
    %c0_i32 = arith.constant 0 : i32
    %c0_i32_0 = arith.constant 0 : i32
    %c0_i32_1 = arith.constant 0 : i32
    return %c0_i32, %c0_i32_0 : i32, i32
  }
  func.func @transform_2(%arg0: i32, %arg1: i32) -> (i32, i32) {
    %c0_i32 = arith.constant 0 : i32
    %c0_i32_0 = arith.constant 0 : i32
    %c0_i32_1 = arith.constant 0 : i32
    return %c0_i32, %c0_i32_0 : i32, i32
  }
  func.func @transform_3(%arg0: i32, %arg1: i32) -> (i32, i32) {
    %c0_i32 = arith.constant 0 : i32
    %c0_i32_0 = arith.constant 0 : i32
    return %c0_i32, %arg1 : i32, i32
  }
  func.func @transform_4(%arg0: i32, %arg1: i32) -> (i32, i32) {
    %c0_i32 = arith.constant 0 : i32
    return %arg0, %arg1 : i32, i32
  }
}

</mosaic_0001>

<bundles_post_ra>
// kernel: gpt_forward.9
= control target key start
LH: loop header
LB: loop body
LE: loop exit
PB: predicated region body
PF: predicated region fallthrough
CT: control target
= control target key end

     0   :  { %vm25_vm0 = vcmask 261120   ;;  %v153_v4 = vmov 32.0   ;;  %vm125_vm8 = vcmask 785408   ;;  %s216_s0 = inlined_call_operand.vmem [shape: f32[16,32], index: 0, kind: input, shape index: {}]   ;;  %s217_s1 = inlined_call_operand.vmem [shape: f32[1,32], index: 1, kind: input, shape index: {}]   ;;  %s218_s2 = inlined_call_operand.vmem [shape: f32[1,32], index: 2, kind: input, shape index: {}]   ;;  %s219_s4 = inlined_call_operand.vmem [shape: f32[1,96], index: 4, kind: input, shape index: {}]   ;;  %s220_s3 = inlined_call_operand.vmem [shape: bf16[32,96], index: 3, kind: input, shape index: {}]   ;;  %s221_s5 = inlined_call_operand.vmem [shape: f32[16,96], index: 5, kind: output, shape index: {}]  }
   0x1   :  { %v21_v0 = vld [vmem:[%s216_s0] sm:$0xff]  ;;  %v22_v2 = vld [vmem:[%s216_s0 + $0x8] sm:$0xff]  ;;  %147 = vrcp.f32 %v153_v4 }
   0x2   :  { %v26_v1 = vsel %vm25_vm0, %v21_v0, 0.0  ;;  %v29_v3 = vsel %vm25_vm0, %v22_v2, 0.0  ;;  %v142_v21 = vld [vmem:[%s220_s3 + $0x8] sm:$0xff]  ;;  %v141_v23 = vld [vmem:[%s220_s3] sm:$0xff] }
   0x3   :  { %27 = vadd.xlane.f32.xlu0 %v26_v1  ;;  %117 = vmatpush.bf16.msra.mxu0 %v142_v21  ;;  %v144_v42 = vld [vmem:[%s217_s1] ss:$0 sm:$0xff] }
   0x4   :  { %v145_v47 = vld [vmem:[%s218_s2] ss:$0 sm:$0xff] }
   0x5   :  { %v146_v52 = vld [vmem:[%s219_s4] ss:$0 sm:$0xff] }
   0x7   :  { %v148_v5 = vpop.eup %147  ;;  %118 = vmatpush.bf16.msra.mxu0 %v141_v23 }
   0x8   :  { %v33_v6 = vmul.f32 32.0, %v148_v5  ;;  %vm37_vm1 = vweird.f32 %v148_v5 }
   0xa   :  { %v34_v7 = vsub.f32 1.0, %v33_v6 }
   0xb   :  { %30 = vadd.xlane.f32.xlu0 %v29_v3 }
   0xc   :  { %v35_v8 = vmul.f32 %v148_v5, %v34_v7 }
   0xe   :  { %v36_v9 = vadd.f32 %v148_v5, %v35_v8 }
  0x10   :  { %v38_v10 = vsel %vm37_vm1, %v148_v5, %v36_v9 }
  0x76   :  { %v28_v11 = vpop.xlane.xlu0 %27 }
  0x77   :  { %v39_v12 = vmul.f32 %v38_v10, %v28_v11 }
  0x79   :  { %v41_v13 = vsub.f32 %v21_v0, %v39_v12 }
  0x7b   :  { %v43_v14 = vmul.f32 %v41_v13, %v41_v13 }
  0x7d   :  { %v45_v15 = vsel %vm25_vm0, %v43_v14, 0.0 }
  0x7e   :  { %46 = vadd.xlane.f32.xlu1 %v45_v15  ;;  %v31_v16 = vpop.xlane.xlu0 %30 }
  0x7f   :  { %v40_v17 = vmul.f32 %v38_v10, %v31_v16 }
  0x81   :  { %v42_v18 = vsub.f32 %v22_v2, %v40_v17 }
  0x83   :  { %v44_v19 = vmul.f32 %v42_v18, %v42_v18 }
  0x85   :  { %v48_v20 = vsel %vm25_vm0, %v44_v19, 0.0 }
  0x86   :  { %49 = vadd.xlane.f32.xlu1 %v48_v20 }
  0xf1   :  { %v47_v22 = vpop.xlane.xlu1 %46 }
  0xf2   :  { %v51_v24 = vmul.f32 %v47_v22, %v38_v10 }
  0xf4   :  { %v53_v25 = vadd.f32 1e-05, %v51_v24 }
  0xf6   :  { %149 = vrsqrt.f32 %v53_v25  ;;  %vm61_vm3 = vweird.f32 %v53_v25 }
  0xf9   :  { %v50_v26 = vpop.xlane.xlu1 %49 }
  0xfa   :  { %v52_v27 = vmul.f32 %v50_v26, %v38_v10 }
  0xfc   :  { %v150_v28 = vpop.eup %149  ;;  %v54_v29 = vadd.f32 1e-05, %v52_v27 }
  0xfd   :  { %v56_v30 = vmul.f32 %v150_v28, %v53_v25  ;;  %vm62_vm2 = vweird.f32 %v150_v28 }
  0xfe   :  { %151 = vrsqrt.f32 %v54_v29  ;;  %vm63_vm4 = vmor %vm61_vm3, %vm62_vm2  ;;  %vm71_vm6 = vweird.f32 %v54_v29 }
  0xff   :  { %v57_v31 = vmul.f32 %v150_v28, %v56_v30 }
 0x101   :  { %v58_v32 = vmul.f32 0.5, %v57_v31 }
 0x103   :  { %v59_v33 = vsub.f32 1.5, %v58_v32 }
 0x104   :  { %v152_v34 = vpop.eup %151 }
 0x105   :  { %v60_v35 = vmul.f32 %v150_v28, %v59_v33  ;;  %v66_v36 = vmul.f32 %v152_v34, %v54_v29  ;;  %vm72_vm5 = vweird.f32 %v152_v34 }
 0x106   :  { %vm73_vm7 = vmor %vm71_vm6, %vm72_vm5 }
 0x107   :  { %v67_v37 = vmul.f32 %v152_v34, %v66_v36  ;;  %v64_v38 = vsel %vm63_vm4, %v150_v28, %v60_v35 }
 0x108   :  { %v75_v41 = vmul.f32 %v64_v38, %v41_v13 }
 0x109   :  { %v68_v39 = vmul.f32 0.5, %v67_v37 }
 0x10a   :  { %v80_v46 = vmul.f32 %v144_v42, %v75_v41 }
 0x10b   :  { %v69_v40 = vsub.f32 1.5, %v68_v39 }
 0x10c   :  { %v85_v49 = vadd.f32 %v145_v47, %v80_v46 }
 0x10d   :  { %v70_v43 = vmul.f32 %v152_v34, %v69_v40 }
 0x10f   :  { %v74_v44 = vsel %vm73_vm7, %v152_v34, %v70_v43 }
 0x110   :  { %v76_v45 = vmul.f32 %v74_v44, %v42_v18 }
 0x112   :  { %v81_v48 = vmul.f32 %v144_v42, %v76_v45 }
 0x114   :  { %v86_v50 = vadd.f32 %v145_v47, %v81_v48 }
 0x116   :  { %v87_v51 = vpack.c.bf16 %v86_v50, %v85_v49 }
 0x118   :  { %140 = vmatmul.msk.bf16.vlgmr.msra.gmra.mxu0 %vm25_vm0, %v87_v51 }
 0x195   :  { %v120_v53 = vpop.f32.mrf.mxu0 }
 0x196   :  { %v121_v54 = vadd.f32 %v146_v52, %v120_v53 }
 0x198   :  { %126 = vst.msk [vmem:[%s221_s5] sm:$0xff] %vm125_vm8, %v121_v54 }
 0x19d   :  { %v122_v55 = vpop.f32.mrf.mxu0 }
 0x19e   :  { %v123_v56 = vadd.f32 %v146_v52, %v122_v55 }
 0x1a0   :  { %127 = vst.msk [vmem:[%s221_s5 + $0x8] sm:$0xff] %vm125_vm8, %v123_v56 }

// kernel: gpt_forward.10
= control target key start
LH: loop header
LB: loop body
LE: loop exit
PB: predicated region body
PF: predicated region fallthrough
CT: control target
= control target key end

     0   :  { %s668_s12 = smov 0   ;;  %s670_s13 = smov 0   ;;  %s728_s0 = inlined_call_operand.vmem [shape: bf16[8,8,8], index: 0, kind: input, shape index: {}]   ;;  %s729_s1 = inlined_call_operand.vmem [shape: bf16[8,8,8], index: 1, kind: input, shape index: {}]   ;;  %s730_s2 = inlined_call_operand.vmem [shape: bf16[8,8,8], index: 2, kind: input, shape index: {}]   ;;  %s731_s3 = inlined_call_operand.vmem [shape: f32[8,8,8], index: 3, kind: output, shape index: {}]  }
   0x1   :  { %s672_s14 = smov 0  }
   0x2 LB: > { %s32_s15 = sadd.s32 1, %s639_s13  ;;  %p574_p0 = scmp.ge.s32.totalorder %s643_s14, 1  ;;  %s643_s14 = sphi %s672_s14, %s13_s14   ;;  %s639_s13 = sphi %s670_s13, %s733_s13   ;;  %s635_s12 = sphi %s668_s12, %s732_s12  }
   0x3   : > { %p34_p1 = scmp.ge.s32.totalorder %s32_s15, 8  ;;  %p190_p2 = scmp.lt.s32.totalorder %s643_s14, 9 }
   0x5   : > { %s735_s15 = smov (%p34_p1, %s32_s15), 0  ;;  %p191_p3 = pnand %p574_p0, %p190_p2 }
   0x6   : > { %p232_p4 = scmp.lt.s32.totalorder (!%p191_p3), %s635_s12, 7 }
   0x7   : > { %194 = sbr.rel (%p191_p3) target bundleno = 626 (0x272), region = 32 }
   0xc   : > { %s737_s12 = smov (!%p232_p4, %s635_s12), 7  ;;  %vm270_vm0 = vcmask 64512   ;;  %vm267_vm1 = vcmask 7168   ;;  %v645_v3 = vmov -inf   ;;  %v384_v4 = vlaneseq }
   0xd   : > { %s689_s16 = sshll.u32 %s737_s12, 2  ;;  %268 = vst.msk [vmem:[#allocation2] sm:$0xff] %vm267_vm1, %v645_v3  ;;  %v646_v12 = vmov 0   ;;  %v647_v13 = vmov 0.0   ;;  %vm429_vm3 = vcmask 1043456   ;;  %s578_s26 = sshll.u32 %s737_s12, 3 }
   0xe   : > { %s245_s19 = scalar_lea.vmem %s729_s1, %s689_s16  ;;  %s238_s22 = scalar_lea.vmem %s728_s0, %s689_s16  ;;  %v385_v5 = vshrl.u32 %v384_v4, 7  ;;  %v389_v6 = vand.u32 127, %v384_v4  ;;  %612 = vset.pattern.permute.xlu0 %v646_v12  ;;  %613 = vset.pattern.permute.xlu1 %v646_v12  ;;  %269 = vst.msk [vmem:[#allocation3] sm:$0xff] %vm267_vm1, %v647_v13 }
   0xf   : > { %v273_v0 = vld [vmem:[%s245_s19] sm:$0xf]  ;;  %614 = vset.pattern.permute.xlu2 %v646_v12  ;;  %271 = vst.msk [vmem:[#allocation4] sm:$0xff] %vm270_vm0, %v647_v13  ;;  %s252_s25 = scalar_lea.vmem %s730_s2, %s689_s16  ;;  %s259_s29 = scalar_lea.vmem %s731_s3, %s578_s26 }
  0x10   : > { %v368_v1 = vsel %vm270_vm0, %v273_v0, 0  ;;  %v272_v2 = vld [vmem:[%s238_s22] sm:$0xf]  ;;  %vm392_vm2 = vcmp.le.s32.totalorder %v389_v6, %v385_v5 }
  0x11   : > { %377 = vmatpush.bf16.xpose.msra.mxu0 %v368_v1  ;;  %v274_v18 = vld [vmem:[%s252_s25] sm:$0xf] }
  0x12   : > { %v431_v19 = vsel %vm429_vm3, %v274_v18, 0 }
  0x13   : > { %440 = vmatpush.bf16.msra.mxu1 %v431_v19 }
  0x14   : > { %v394_v14 = vld [vmem:[#allocation2] sm:$0xff] }
  0x15   : > { %v410_v28 = vld [vmem:[#allocation3] sm:$0xff] }
  0x16   : > { %v418_v36 = vld [vmem:[#allocation4] sm:$0xff] }
  0x18   : > { %581 = vmatmul.msk.bf16.vlgmr.msra.gmra.mxu0 %vm270_vm0, %v272_v2 }
  0x95   : > { %v379_v7 = vpop.f32.mrf.mxu0 }
  0x96   : > { %v383_v8 = vmul.f32 0.35355338, %v379_v7 }
  0x98   : > { %v393_v9 = vsel %vm392_vm2, %v383_v8, -1e+30 }
  0x99   : > { %v395_v10 = vsel %vm270_vm0, %v393_v9, -inf }
  0x9a   : > { %396 = vmax.xlane.f32.xlu0 %v395_v10 }
  0x9d   : > { %v381_v11 = vpop.f32.mrf.mxu0 }
 0x10d   : > { %v397_v15 = vpop.xlane.xlu0 %396 }
 0x10e   : > { %v398_v16 = vmax.f32 %v394_v14, %v397_v15 }
 0x110   : > { %v399_v17 = vsub.f32 %v394_v14, %v398_v16  ;;  %448 = vst.msk [vmem:[#allocation2] sm:$0xff] %vm267_vm1, %v398_v16  ;;  %404 = vperm.xlu0 %612, %v398_v16  }
 0x112   : > { %v400_v26 = vmul.f32 1.442695, %v399_v17 }
 0x182   : > { %v405_v20 = vpop.permute.xlu0 %404 }
 0x183   : > { %v407_v21 = vsub.f32 %v393_v9, %v405_v20 }
 0x185   : > { %v408_v22 = vmul.f32 1.442695, %v407_v21 }
 0x187   : > { %615 = vpow2.f32 %v408_v22 }
 0x188   : > { %617 = vpow2.f32 %v400_v26 }
 0x18d   : > { %v616_v23 = vpop.eup %615 }
 0x18e   : > { %v412_v24 = vsel %vm270_vm0, %v616_v23, 0.0  ;;  %v425_v25 = vpack.c.bf16 %v616_v23, %v616_v23  ;;  %v618_v27 = vpop.eup %617 }
 0x18f   : > { %413 = vadd.xlane.f32.xlu1 %v412_v24  ;;  %v411_v29 = vmul.f32 %v618_v27, %v410_v28 }
 0x190   : > { %582 = vmatmul.msk.bf16.vlgmr.msra.gmra.mxu1 %vm270_vm0, %v425_v25 }
 0x1a8   : > { %421 = vperm.xlu1 %613, %v618_v27  }
 0x202   : > { %v414_v30 = vpop.xlane.xlu1 %413 }
 0x203   : > { %v415_v31 = vadd.f32 %v414_v30, %v411_v29 }
 0x205   : > { %417 = vst.msk [vmem:[#allocation3] sm:$0xff] %vm267_vm1, %v415_v31 }
 0x20c   : > { %v452_v32 = vld [vmem:[#allocation3] sm:$0xff] }
 0x20d   : > { %v442_v33 = vpop.f32.mrf.mxu1  ;;  %619 = vrcp.f32 %v452_v32 }
 0x213   : > { %v620_v34 = vpop.eup %619 }
 0x214   : > { %457 = vperm.xlu2 %614, %v620_v34  }
 0x215   : > { %v444_v35 = vpop.f32.mrf.mxu1 }
 0x21a   : > { %v422_v37 = vpop.permute.xlu1 %421 }
 0x21b   : > { %v424_v38 = vmul.f32 %v422_v37, %v418_v36 }
 0x21d   : > { %v446_v39 = vadd.f32 %v442_v33, %v424_v38 }
 0x21f   : > { %447 = vst.msk [vmem:[#allocation4] sm:$0xff] %vm270_vm0, %v446_v39 }
 0x226   : > { %v454_v40 = vld [vmem:[#allocation4] sm:$0xff] }
 0x26e   : > { %v458_v41 = vpop.permute.xlu2 %457 }
 0x26f   : > { %v460_v42 = vmul.f32 %v458_v41, %v454_v40 }
 0x271   : > { %462 = vst.msk [vmem:[%s259_s29] sm:$0xff] %vm270_vm0, %v460_v42 }
 0x272 PF: > { %s13_s14 = sadd.s32 1, %s643_s14   ;;  %s732_s12 = smov %s639_s13 }
 0x273   : > { %p10_p5 = scmp.ge.s32.totalorder %s13_s14, 10   ;;  %s733_s13 = smov %s735_s15 }
 0x275   :  { %12 = sbr.rel (!%p10_p5) target bundleno = 2 (0x2), region = 84 }

// kernel: gpt_forward.11
= control target key start
LH: loop header
LB: loop body
LE: loop exit
PB: predicated region body
PF: predicated region fallthrough
CT: control target
= control target key end

     0   :  { %vm41_vm0 = vcmask 261120   ;;  %s133_s1 = inlined_call_operand.vmem [shape: bf16[32,32], index: 1, kind: input, shape index: {}]   ;;  %s134_s0 = inlined_call_operand.vmem [shape: f32[16,32], index: 0, kind: input, shape index: {}]   ;;  %s135_s2 = inlined_call_operand.vmem [shape: f32[1,32], index: 2, kind: input, shape index: {}]   ;;  %s136_s3 = inlined_call_operand.vmem [shape: f32[16,32], index: 3, kind: input, shape index: {}, may-alias: {3,4}]   ;;  %s137_s4 = inlined_call_operand.vmem [shape: f32[16,32], index: 4, kind: output, shape index: {}, may-alias: {3,4}]  }
   0x1   :  { %v79_v0 = vld [vmem:[%s133_s1 + $0x8] sm:$0xff]  ;;  %v78_v1 = vld [vmem:[%s133_s1] sm:$0xff] }
   0x2   :  { %51 = vmatpush.bf16.msra.mxu0 %v79_v0  ;;  %v18_v2 = vld [vmem:[%s134_s0] sm:$0xff]  ;;  %v19_v3 = vld [vmem:[%s134_s0 + $0x8] sm:$0xff] }
   0x3   :  { %v20_v4 = vpack.c.bf16 %v19_v3, %v18_v2  ;;  %v80_v5 = vld [vmem:[%s135_s2] ss:$0 sm:$0xff] }
   0x4   :  { %v59_v7 = vld [vmem:[%s136_s3] sm:$0xff] }
   0x6   :  { %52 = vmatpush.bf16.msra.mxu0 %v78_v1 }
   0x9   :  { %77 = vmatmul.msk.bf16.vlgmr.msra.gmra.mxu0 %vm41_vm0, %v20_v4 }
  0x86   :  { %v54_v6 = vpop.f32.mrf.mxu0 }
  0x87   :  { %v55_v8 = vadd.f32 %v80_v5, %v54_v6 }
  0x89   :  { %v61_v9 = vadd.f32 %v59_v7, %v55_v8 }
  0x8b   :  { %63 = vst.msk [vmem:[%s137_s4] sm:$0xff] %vm41_vm0, %v61_v9 }
  0x8e   :  { %v56_v10 = vpop.f32.mrf.mxu0 }
  0x8f   :  { %v57_v12 = vadd.f32 %v80_v5, %v56_v10 }
  0x92   :  { %v60_v11 = vld [vmem:[%s136_s3 + $0x8] sm:$0xff] }
  0x93   :  { %v62_v13 = vadd.f32 %v60_v11, %v57_v12 }
  0x95   :  { %64 = vst.msk [vmem:[%s137_s4 + $0x8] sm:$0xff] %vm41_vm0, %v62_v13 }

// kernel: gpt_forward.12
= control target key start
LH: loop header
LB: loop body
LE: loop exit
PB: predicated region body
PF: predicated region fallthrough
CT: control target
= control target key end

     0   :  { %vm31_vm0 = vcmask 261120   ;;  %v308_v4 = vmov 32.0   ;;  %s420_s0 = inlined_call_operand.vmem [shape: f32[16,32], index: 0, kind: input, shape index: {}, may-alias: {0,7}]   ;;  %s421_s1 = inlined_call_operand.vmem [shape: f32[1,32], index: 1, kind: input, shape index: {}]   ;;  %s422_s2 = inlined_call_operand.vmem [shape: f32[1,32], index: 2, kind: input, shape index: {}]   ;;  %s423_s4 = inlined_call_operand.vmem [shape: f32[1,128], index: 4, kind: input, shape index: {}]   ;;  %s424_s3 = inlined_call_operand.vmem [shape: bf16[32,128], index: 3, kind: input, shape index: {}]   ;;  %s425_s6 = inlined_call_operand.vmem [shape: f32[1,32], index: 6, kind: input, shape index: {}]   ;;  %s426_s5 = inlined_call_operand.vmem [shape: bf16[128,32], index: 5, kind: input, shape index: {}]   ;;  %s427_s7 = inlined_call_operand.vmem [shape: f32[16,32], index: 7, kind: output, shape index: {}, may-alias: {0,7}]  }
   0x1   :  { %v352_v0 = vld [vmem:[%s420_s0] sm:$0xff]  ;;  %v359_v2 = vld [vmem:[%s420_s0 + $0x8] sm:$0xff]  ;;  %298 = vrcp.f32 %v308_v4  ;;  %v292_v52 = vld [vmem:[%s426_s5 + $0x38] sm:$0xff] }
   0x2   :  { %v32_v1 = vsel %vm31_vm0, %v352_v0, 0.0  ;;  %v35_v3 = vsel %vm31_vm0, %v359_v2, 0.0  ;;  %v284_v21 = vld [vmem:[%s424_s3 + $0x8] sm:$0xff]  ;;  %v283_v23 = vld [vmem:[%s424_s3] sm:$0xff]  ;;  %214 = vmatpush.bf16.msra.mxu1 %v292_v52  ;;  %v291_v53 = vld [vmem:[%s426_s5 + $0x30] sm:$0xff] }
   0x3   :  { %33 = vadd.xlane.f32.xlu0 %v32_v1  ;;  %123 = vmatpush.bf16.msra.mxu0 %v284_v21  ;;  %v294_v42 = vld [vmem:[%s421_s1] ss:$0 sm:$0xff]  ;;  %v290_v54 = vld [vmem:[%s426_s5 + $0x28] sm:$0xff]  ;;  %v288_v56 = vld [vmem:[%s426_s5 + $0x18] sm:$0xff] }
   0x4   :  { %v295_v47 = vld [vmem:[%s422_s2] ss:$0 sm:$0xff]  ;;  %v287_v57 = vld [vmem:[%s426_s5 + $0x10] sm:$0xff]  ;;  %v286_v58 = vld [vmem:[%s426_s5 + $0x8] sm:$0xff] }
   0x5   :  { %v289_v55 = vld [vmem:[%s426_s5 + $0x20] sm:$0xff] }
   0x6   :  { %215 = vmatpush.bf16.msra.mxu1 %v291_v53  ;;  %v285_v59 = vld [vmem:[%s426_s5] sm:$0xff] }
   0x7   :  { %v299_v5 = vpop.eup %298  ;;  %124 = vmatpush.bf16.msra.mxu0 %v283_v23  ;;  %v296_v60 = vld [vmem:[%s423_s4] ss:$0 sm:$0xff] }
   0x8   :  { %v39_v6 = vmul.f32 32.0, %v299_v5  ;;  %vm43_vm1 = vweird.f32 %v299_v5 }
   0xa   :  { %v40_v7 = vsub.f32 1.0, %v39_v6  ;;  %216 = vmatpush.bf16.msra.mxu1 %v290_v54 }
   0xb   :  { %36 = vadd.xlane.f32.xlu0 %v35_v3 }
   0xc   :  { %v41_v8 = vmul.f32 %v299_v5, %v40_v7 }
   0xe   :  { %v42_v9 = vadd.f32 %v299_v5, %v41_v8  ;;  %217 = vmatpush.bf16.msra.mxu1 %v289_v55 }
  0x10   :  { %v44_v10 = vsel %vm43_vm1, %v299_v5, %v42_v9 }
  0x12   :  { %218 = vmatpush.bf16.msra.mxu1 %v288_v56 }
  0x16   :  { %219 = vmatpush.bf16.msra.mxu1 %v287_v57 }
  0x1a   :  { %220 = vmatpush.bf16.msra.mxu1 %v286_v58 }
  0x1e   :  { %221 = vmatpush.bf16.msra.mxu1 %v285_v59 }
  0x76   :  { %v34_v11 = vpop.xlane.xlu0 %33 }
  0x77   :  { %v45_v12 = vmul.f32 %v44_v10, %v34_v11 }
  0x79   :  { %v47_v13 = vsub.f32 %v352_v0, %v45_v12 }
  0x7b   :  { %v49_v14 = vmul.f32 %v47_v13, %v47_v13 }
  0x7d   :  { %v51_v15 = vsel %vm31_vm0, %v49_v14, 0.0 }
  0x7e   :  { %52 = vadd.xlane.f32.xlu1 %v51_v15  ;;  %v37_v16 = vpop.xlane.xlu0 %36 }
  0x7f   :  { %v46_v17 = vmul.f32 %v44_v10, %v37_v16 }
  0x81   :  { %v48_v18 = vsub.f32 %v359_v2, %v46_v17 }
  0x83   :  { %v50_v19 = vmul.f32 %v48_v18, %v48_v18 }
  0x85   :  { %v54_v20 = vsel %vm31_vm0, %v50_v19, 0.0 }
  0x86   :  { %55 = vadd.xlane.f32.xlu1 %v54_v20 }
  0xf1   :  { %v53_v22 = vpop.xlane.xlu1 %52 }
  0xf2   :  { %v57_v24 = vmul.f32 %v53_v22, %v44_v10  ;;  %v297_v22 = vld [vmem:[%s425_s6] ss:$0 sm:$0xff] }
  0xf4   :  { %v59_v25 = vadd.f32 1e-05, %v57_v24 }
  0xf6   :  { %300 = vrsqrt.f32 %v59_v25  ;;  %vm67_vm3 = vweird.f32 %v59_v25 }
  0xf9   :  { %v56_v26 = vpop.xlane.xlu1 %55 }
  0xfa   :  { %v58_v27 = vmul.f32 %v56_v26, %v44_v10 }
  0xfc   :  { %v301_v28 = vpop.eup %300  ;;  %v60_v29 = vadd.f32 1e-05, %v58_v27 }
  0xfd   :  { %v62_v30 = vmul.f32 %v301_v28, %v59_v25  ;;  %vm68_vm2 = vweird.f32 %v301_v28 }
  0xfe   :  { %302 = vrsqrt.f32 %v60_v29  ;;  %vm69_vm4 = vmor %vm67_vm3, %vm68_vm2  ;;  %vm77_vm6 = vweird.f32 %v60_v29 }
  0xff   :  { %v63_v31 = vmul.f32 %v301_v28, %v62_v30 }
 0x101   :  { %v64_v32 = vmul.f32 0.5, %v63_v31 }
 0x103   :  { %v65_v33 = vsub.f32 1.5, %v64_v32 }
 0x104   :  { %v303_v34 = vpop.eup %302 }
 0x105   :  { %v66_v35 = vmul.f32 %v301_v28, %v65_v33  ;;  %v72_v36 = vmul.f32 %v303_v34, %v60_v29  ;;  %vm78_vm5 = vweird.f32 %v303_v34 }
 0x106   :  { %vm79_vm7 = vmor %vm77_vm6, %vm78_vm5 }
 0x107   :  { %v73_v37 = vmul.f32 %v303_v34, %v72_v36  ;;  %v70_v38 = vsel %vm69_vm4, %v301_v28, %v66_v35 }
 0x108   :  { %v81_v41 = vmul.f32 %v70_v38, %v47_v13 }
 0x109   :  { %v74_v39 = vmul.f32 0.5, %v73_v37 }
 0x10a   :  { %v86_v46 = vmul.f32 %v294_v42, %v81_v41 }
 0x10b   :  { %v75_v40 = vsub.f32 1.5, %v74_v39 }
 0x10c   :  { %v91_v49 = vadd.f32 %v295_v47, %v86_v46 }
 0x10d   :  { %v76_v43 = vmul.f32 %v303_v34, %v75_v40 }
 0x10f   :  { %v80_v44 = vsel %vm79_vm7, %v303_v34, %v76_v43 }
 0x110   :  { %v82_v45 = vmul.f32 %v80_v44, %v48_v18 }
 0x112   :  { %v87_v48 = vmul.f32 %v294_v42, %v82_v45 }
 0x114   :  { %v92_v50 = vadd.f32 %v295_v47, %v87_v48 }
 0x116   :  { %v93_v51 = vpack.c.bf16 %v92_v50, %v91_v49 }
 0x118   :  { %250 = vmatmul.msk.bf16.vlgmr.msra.gmra.mxu0 %vm31_vm0, %v93_v51 }
 0x195   :  { %v126_v61 = vpop.f32.mrf.mxu0 }
 0x196   :  { %v127_v62 = vadd.f32 %v296_v60, %v126_v61 }
 0x198   :  { %v133_v63 = vmul.f32 0.044715, %v127_v62  ;;  %v131_v16 = vmul.f32 0.5, %v127_v62 }
 0x19a   :  { %v135_v1 = vmul.f32 %v133_v63, %v127_v62 }
 0x19c   :  { %v137_v3 = vmul.f32 %v135_v1, %v127_v62 }
 0x19d   :  { %v128_v4 = vpop.f32.mrf.mxu0 }
 0x19e   :  { %v129_v5 = vadd.f32 %v296_v60, %v128_v4  ;;  %v139_v6 = vadd.f32 %v137_v3, %v127_v62 }
 0x1a0   :  { %v134_v7 = vmul.f32 0.044715, %v129_v5  ;;  %v141_v9 = vmul.f32 0.7978846, %v139_v6  ;;  %v132_v17 = vmul.f32 0.5, %v129_v5 }
 0x1a2   :  { %v136_v8 = vmul.f32 %v134_v7, %v129_v5  ;;  %304 = vtanh.f32 %v141_v9 }
 0x1a4   :  { %v138_v10 = vmul.f32 %v136_v8, %v129_v5 }
 0x1a6   :  { %v140_v11 = vadd.f32 %v138_v10, %v129_v5 }
 0x1a8   :  { %v142_v12 = vmul.f32 0.7978846, %v140_v11  ;;  %v305_v13 = vpop.eup %304 }
 0x1a9   :  { %v145_v14 = vadd.f32 1.0, %v305_v13 }
 0x1aa   :  { %306 = vtanh.f32 %v142_v12 }
 0x1ab   :  { %v147_v19 = vmul.f32 %v145_v14, %v131_v16 }
 0x1b0   :  { %v307_v15 = vpop.eup %306 }
 0x1b1   :  { %v146_v18 = vadd.f32 1.0, %v307_v15 }
 0x1b3   :  { %v148_v20 = vmul.f32 %v146_v18, %v132_v17 }
 0x1b5   :  { %v149_v21 = vpack.c.bf16 %v148_v20, %v147_v19 }
 0x1b7   :  { %222 = vmatmul.bf16.vlgmr.msra.gmra.mxu1 %v149_v21 }
 0x234   :  { %v223_v23 = vpop.f32.mrf.mxu1 }
 0x235   :  { %v228_v24 = vadd.f32 %v223_v23, %v352_v0 }
 0x237   :  { %v234_v25 = vadd.f32 %v297_v22, %v228_v24 }
 0x239   :  { %236 = vst.msk [vmem:[%s427_s7] sm:$0xff] %vm31_vm0, %v234_v25 }
 0x23c   :  { %v225_v26 = vpop.f32.mrf.mxu1 }
 0x23d   :  { %v229_v27 = vadd.f32 %v225_v26, %v359_v2 }
 0x23f   :  { %v235_v28 = vadd.f32 %v297_v22, %v229_v27 }
 0x241   :  { %237 = vst.msk [vmem:[%s427_s7 + $0x8] sm:$0xff] %vm31_vm0, %v235_v28 }

// kernel: gpt_forward.17
= control target key start
LH: loop header
LB: loop body
LE: loop exit
PB: predicated region body
PF: predicated region fallthrough
CT: control target
= control target key end

     0   :  { %vm23_vm0 = vcmask 261120   ;;  %s243_s0 = inlined_call_operand.vmem [shape: f32[16,32], index: 0, kind: input, shape index: {}]   ;;  %s244_s1 = inlined_call_operand.vmem [shape: f32[1,32], index: 1, kind: input, shape index: {}]   ;;  %s245_s2 = inlined_call_operand.vmem [shape: f32[1,32], index: 2, kind: input, shape index: {}]   ;;  %s246_s3 = inlined_call_operand.vmem [shape: bf16[32,128], index: 3, kind: input, shape index: {}]   ;;  %s247_s4 = inlined_call_operand.hbm [shape: f32[16,128], index: 4, kind: output, shape index: {}]  }
   0x1   :  { %v19_v0 = vld [vmem:[%s243_s0] sm:$0xff] }
   0x2   :  { %v24_v1 = vsel %vm23_vm0, %v19_v0, 0.0 }
   0x3   :  { %9 = vsyncpa [#allocation3], 0  ;;  %25 = vadd.xlane.f32.xlu0 %v24_v1  ;;  %v20_v2 = vld [vmem:[%s243_s0 + $0x8] sm:$0xff]  ;;  %v188_v4 = vmov 32.0   ;;  %v148_v23 = vld [vmem:[%s246_s3] sm:$0xff]  ;;  %s189_s25 = smov [#allocation2]  }
   0x4   :  { %v27_v3 = vsel %vm23_vm0, %v20_v2, 0.0  ;;  %156 = vrcp.f32 %v188_v4  ;;  %v149_v21 = vld [vmem:[%s246_s3 + $0x8] sm:$0xff]  ;;  %v154_v42 = vld [vmem:[%s244_s1] ss:$0 sm:$0xff]  ;;  %s125_s1 = sshll.u32 %s189_s25, 4  ;;  %s127_s28 = sshll.u32 %s247_s4, 4  ;;  %s126_s1 = int_to_ptr.vmem [resolvable:$true] %s125_s1  ;;  %s128_s28 = int_to_ptr.hbm [resolvable:$true] %s127_s28 }
   0x5   :  { %111 = vmatpush.bf16.msra.mxu0 %v149_v21  ;;  %v155_v47 = vld [vmem:[%s245_s2] ss:$0 sm:$0xff]  ;;  %s190_s29 = smov 128   ;;  %s191_s2 = smov 8  }
   0x9   :  { %112 = vmatpush.bf16.msra.mxu0 %v148_v23 }
   0xa   :  { %v157_v5 = vpop.eup %156 }
   0xb   :  { %28 = vadd.xlane.f32.xlu0 %v27_v3  ;;  %v31_v6 = vmul.f32 32.0, %v157_v5  ;;  %vm35_vm1 = vweird.f32 %v157_v5 }
   0xd   :  { %v32_v7 = vsub.f32 1.0, %v31_v6 }
   0xf   :  { %v33_v8 = vmul.f32 %v157_v5, %v32_v7 }
  0x11   :  { %v34_v9 = vadd.f32 %v157_v5, %v33_v8 }
  0x13   :  { %v36_v10 = vsel %vm35_vm1, %v157_v5, %v34_v9 }
  0x76   :  { %v26_v11 = vpop.xlane.xlu0 %25 }
  0x77   :  { %v37_v12 = vmul.f32 %v36_v10, %v26_v11 }
  0x79   :  { %v39_v13 = vsub.f32 %v19_v0, %v37_v12 }
  0x7b   :  { %v41_v14 = vmul.f32 %v39_v13, %v39_v13 }
  0x7d   :  { %v43_v15 = vsel %vm23_vm0, %v41_v14, 0.0 }
  0x7e   :  { %44 = vadd.xlane.f32.xlu1 %v43_v15  ;;  %v29_v16 = vpop.xlane.xlu0 %28 }
  0x7f   :  { %v38_v17 = vmul.f32 %v36_v10, %v29_v16 }
  0x81   :  { %v40_v18 = vsub.f32 %v20_v2, %v38_v17 }
  0x83   :  { %v42_v19 = vmul.f32 %v40_v18, %v40_v18 }
  0x85   :  { %v46_v20 = vsel %vm23_vm0, %v42_v19, 0.0 }
  0x86   :  { %47 = vadd.xlane.f32.xlu1 %v46_v20 }
  0xf1   :  { %v45_v22 = vpop.xlane.xlu1 %44 }
  0xf2   :  { %v49_v24 = vmul.f32 %v45_v22, %v36_v10 }
  0xf4   :  { %v51_v25 = vadd.f32 1e-05, %v49_v24 }
  0xf6   :  { %158 = vrsqrt.f32 %v51_v25  ;;  %vm59_vm3 = vweird.f32 %v51_v25 }
  0xf9   :  { %v48_v26 = vpop.xlane.xlu1 %47 }
  0xfa   :  { %v50_v27 = vmul.f32 %v48_v26, %v36_v10 }
  0xfc   :  { %v159_v28 = vpop.eup %158  ;;  %v52_v29 = vadd.f32 1e-05, %v50_v27 }
  0xfd   :  { %v54_v30 = vmul.f32 %v159_v28, %v51_v25  ;;  %vm60_vm2 = vweird.f32 %v159_v28 }
  0xfe   :  { %160 = vrsqrt.f32 %v52_v29  ;;  %vm61_vm4 = vmor %vm59_vm3, %vm60_vm2  ;;  %vm69_vm6 = vweird.f32 %v52_v29 }
  0xff   :  { %v55_v31 = vmul.f32 %v159_v28, %v54_v30 }
 0x101   :  { %v56_v32 = vmul.f32 0.5, %v55_v31 }
 0x103   :  { %v57_v33 = vsub.f32 1.5, %v56_v32 }
 0x104   :  { %v161_v34 = vpop.eup %160 }
 0x105   :  { %v58_v35 = vmul.f32 %v159_v28, %v57_v33  ;;  %v64_v36 = vmul.f32 %v161_v34, %v52_v29  ;;  %vm70_vm5 = vweird.f32 %v161_v34 }
 0x106   :  { %vm71_vm7 = vmor %vm69_vm6, %vm70_vm5 }
 0x107   :  { %v65_v37 = vmul.f32 %v161_v34, %v64_v36  ;;  %v62_v38 = vsel %vm61_vm4, %v159_v28, %v58_v35 }
 0x108   :  { %v73_v41 = vmul.f32 %v62_v38, %v39_v13 }
 0x109   :  { %v66_v39 = vmul.f32 0.5, %v65_v37 }
 0x10a   :  { %v78_v46 = vmul.f32 %v154_v42, %v73_v41 }
 0x10b   :  { %v67_v40 = vsub.f32 1.5, %v66_v39 }
 0x10c   :  { %v83_v49 = vadd.f32 %v155_v47, %v78_v46 }
 0x10d   :  { %v68_v43 = vmul.f32 %v161_v34, %v67_v40 }
 0x10f   :  { %v72_v44 = vsel %vm71_vm7, %v161_v34, %v68_v43 }
 0x110   :  { %v74_v45 = vmul.f32 %v72_v44, %v40_v18 }
 0x112   :  { %v79_v48 = vmul.f32 %v154_v42, %v74_v45 }
 0x114   :  { %v84_v50 = vadd.f32 %v155_v47, %v79_v48 }
 0x116   :  { %v85_v51 = vpack.c.bf16 %v84_v50, %v83_v49 }
 0x118   :  { %147 = vmatmul.msk.bf16.vlgmr.msra.gmra.mxu0 %vm23_vm0, %v85_v51 }
 0x195   :  { %v114_v52 = vpop.f32.mrf.mxu0 }
 0x196   :  { %119 = vst [vmem:[#allocation2] sm:$0xff] %v114_v52 }
 0x19d   :  { %v116_v53 = vpop.f32.mrf.mxu0 }
 0x19e   :  { %120 = vst [vmem:[#allocation2 + $0x8] sm:$0xff] %v116_v53 }
 0x19f   :  { %133 = dma.vmem_to_hbm [thread:$0]  %s126_s1, 256, %s128_s28, [#allocation3], %s190_s29, %s190_s29, %s191_s2  }
 0x1a0   :  { %186 = dma.done.wait [#allocation3], 256  }
 0x1a1   :  { %187 = vsyncadd [#allocation3], 4294967040 }
 0x1a2   :  { %138 = vsyncpa [#allocation3], 1 }

</bundles_post_ra>
